<compile_context>
chip_gen: v6e
topology: v6e:2x2x1
jax: 0.10.0
libtpu: 0.0.40
codegen_flags: <defaults>
</compile_context>

<pallas_src>
import functools

import jax
import jax.numpy as jnp
from jax.experimental import pallas as pl
from jax.experimental.pallas import tpu as pltpu


def _round_up(x, m):
    return ((x + m - 1) // m) * m


# ---------------------------------------------------------------------------
# Fused kernel: per-point MLP -> global max pool -> classification head
# ---------------------------------------------------------------------------
def _pointnet_kernel(x_ref,                       # (1, 3, tn)  f32
                     w1_ref,                      # (64, 3)     f32 (bn1 folded)
                     w2_ref, w3_ref, w4_ref,      # (C_out,C_in) bf16 (bn folded)
                     w5_ref,                      # (emb, 128)  bf16 (bn5 folded)
                     wl1_ref,                     # (512, emb)  bf16 (bn6 folded)
                     wl2_ref,                     # (out_pad, 512) bf16
                     bias_ref,                    # (TOT, 1)    f32 packed biases
                     out_ref,                     # (1, out_pad, 1) f32
                     pool_ref,                    # (emb, 1)    f32 scratch
                     *, emb, out_pad):
    t = pl.program_id(1)

    x = x_ref[0]                                          # (3, tn) f32

    # conv1 (3 -> 64, bn1 scale folded): 3 VPU broadcast FMAs, then bias+ReLU.
    w1 = w1_ref[...]
    h = (w1[:, 0:1] * x[0:1, :]
         + w1[:, 1:2] * x[1:2, :]
         + w1[:, 2:3] * x[2:3, :])                        # (64, tn)
    h = jnp.maximum(h + bias_ref[0:64, :], 0.0)

    def layer(h, w_ref, off, c_out):
        # Conv1d(k=1, bias=False) + folded BN scale: bf16 MXU matmul, f32 acc,
        # epilogue = bias + ReLU in f32.
        y = jnp.dot(w_ref[...], h.astype(jnp.bfloat16),
                    preferred_element_type=jnp.float32)   # (c_out, tn)
        return jnp.maximum(y + bias_ref[off:off + c_out, :], 0.0)

    h = layer(h, w2_ref, 64, 64)                          # 64  -> 64
    h = layer(h, w3_ref, 128, 64)                         # 64  -> 64
    h = layer(h, w4_ref, 192, 128)                        # 64  -> 128
    h = layer(h, w5_ref, 320, emb)                        # 128 -> emb

    # adaptive_max_pool1d(x, 1): lane reduction over the point tile,
    # accumulated across tiles in the resident VMEM scratch.
    tile_max = jnp.max(h, axis=-1, keepdims=True)         # (emb, 1)

    @pl.when(t == 0)
    def _():
        pool_ref[...] = tile_max

    @pl.when(t > 0)
    def _():
        pool_ref[...] = jnp.maximum(pool_ref[...], tile_max)

    # Classification head, fused on the last point tile of each batch element.
    @pl.when(t == pl.num_programs(1) - 1)
    def _():
        # Broadcast the pooled column across 128 lanes so both head matmuls use
        # well-formed (N=128) MXU shapes; take lane 0 at the end.  Extra MACs
        # are negligible (runs once per batch element).
        g = jnp.broadcast_to(pool_ref[...], (emb, 128)).astype(jnp.bfloat16)
        h1 = jnp.dot(wl1_ref[...], g,
                     preferred_element_type=jnp.float32)              # (512,128)
        h1 = jnp.maximum(h1 + bias_ref[320 + emb:832 + emb, :], 0.0)  # bn6+relu
        # dp1: nn.Dropout() is the identity under eval/inference semantics.
        o = jnp.dot(wl2_ref[...], h1.astype(jnp.bfloat16),
                    preferred_element_type=jnp.float32)       # (out_pad, 128)
        out_ref[0] = o[:, 0:1] + bias_ref[832 + emb:832 + emb + out_pad, :]


# ---------------------------------------------------------------------------
# Wrapper
# ---------------------------------------------------------------------------
def pointnet_forward(x_ncl, params, *, tile_n=1024):
    """x_ncl: (B, 3, N) float32 (native PyTorch Conv1d layout). -> (B, out)."""
    x = x_ncl.astype(jnp.float32)
    B, c_in, N = x.shape
    assert c_in == 3
    emb = params["w5"].shape[0]
    out_c = params["wl2"].shape[0]
    assert emb % 8 == 0

    # --- point tile (lane dim): multiple of 256, VMEM-budgeted (v7x 64 MiB) --
    c_max = max(128, emb)
    tn_cap = max(256, ((24 * 1024 * 1024) // (6 * 4 * c_max)) // 256 * 256)
    tn = min(_round_up(tile_n, 256), tn_cap, _round_up(N, 256))
    n_pad = _round_up(N, tn)
    if n_pad != N:
        # Edge-replicate valid points: the global max is unchanged, and no
        # per-tile -inf masking is needed inside the kernel.
        x = jnp.pad(x, ((0, 0), (0, 0), (0, n_pad - N)), mode="edge")
    num_tiles = n_pad // tn

    # --- fold BN scale into weights; bf16 weights for the MXU layers ---------
    f32, bf16 = jnp.float32, jnp.bfloat16
    w1 = (params["w1"] * params["s1"][:, None]).astype(f32)     # (64, 3), exact
    w2 = (params["w2"] * params["s2"][:, None]).astype(bf16)
    w3 = (params["w3"] * params["s3"][:, None]).astype(bf16)
    w4 = (params["w4"] * params["s4"][:, None]).astype(bf16)
    w5 = (params["w5"] * params["s5"][:, None]).astype(bf16)
    wl1 = (params["wl1"] * params["s6"][:, None]).astype(bf16)

    # Pad linear2 output rows to a dense 128 multiple; slice back afterwards.
    out_pad = _round_up(max(out_c, 128), 128)
    wl2 = jnp.zeros((out_pad, 512), f32).at[:out_c].set(params["wl2"]).astype(bf16)
    bl2 = jnp.zeros((out_pad,), f32).at[:out_c].set(params["bl2"])

    # --- pack all per-channel biases into one (TOT, 1) array (one DMA) -------
    # offsets: b1@0, b2@64, b3@128, b4@192, b5@320, b6@320+emb, bl2@832+emb
    bias_all = jnp.concatenate([
        params["b1"], params["b2"], params["b3"], params["b4"],
        params["b5"], params["b6"], bl2]).astype(f32).reshape(-1, 1)

    weights = [w1, w2, w3, w4, w5, wl1, wl2, bias_all]

    def const_spec(a):
        nd = a.ndim
        return pl.BlockSpec(a.shape, lambda b, t, _nd=nd: (0,) * _nd)

    kernel = functools.partial(_pointnet_kernel, emb=emb, out_pad=out_pad)

    out = pl.pallas_call(
        kernel,
        out_shape=jax.ShapeDtypeStruct((B, out_pad, 1), jnp.float32),
        grid=(B, num_tiles),
        in_specs=([pl.BlockSpec((1, 3, tn), lambda b, t: (b, 0, t))]
                  + [const_spec(a) for a in weights]),
        out_specs=pl.BlockSpec((1, out_pad, 1), lambda b, t: (b, 0, 0)),
        scratch_shapes=[pltpu.VMEM((emb, 1), jnp.float32)],
        compiler_params=pltpu.CompilerParams(
            dimension_semantics=("parallel", "arbitrary"),
            vmem_limit_bytes=48 * 1024 * 1024),
    )(x, *weights)

    return out.reshape(B, out_pad)[:, :out_c]


# ---------------------------------------------------------------------------
# Deterministic parameter construction (synthetic, matches module shapes)
# ---------------------------------------------------------------------------
def _bn_params(key, c, eps=1e-5):
    kg, kb, km, kv = jax.random.split(key, 4)
    gamma = 1.0 + 0.1 * jax.random.normal(kg, (c,), jnp.float32)
    beta = 0.1 * jax.random.normal(kb, (c,), jnp.float32)
    mean = 0.1 * jax.random.normal(km, (c,), jnp.float32)
    var = jax.random.uniform(kv, (c,), minval=0.5, maxval=1.5, dtype=jnp.float32)
    scale = gamma / jnp.sqrt(var + eps)       # folded BN: y = scale*x + bias
    bias = beta - mean * scale
    return scale, bias


def make_params(key, emb_dims=64, output_channels=2):
    keys = jax.random.split(key, 16)

    def w(k, cout, cin):                      # PyTorch (C_out, C_in) layout
        return (jax.random.normal(k, (cout, cin), jnp.float32)
                / jnp.sqrt(jnp.float32(cin)))

    p = {}
    dims = [(64, 3), (64, 64), (64, 64), (128, 64), (emb_dims, 128)]
    for i, (cout, cin) in enumerate(dims, start=1):
        p[f"w{i}"] = w(keys[2 * i - 2], cout, cin)
        p[f"s{i}"], p[f"b{i}"] = _bn_params(keys[2 * i - 1], cout)

    p["wl1"] = w(keys[10], 512, emb_dims)            # linear1 (bias=False)
    p["s6"], p["b6"] = _bn_params(keys[11], 512)     # bn6
    p["wl2"] = w(keys[12], output_channels, 512)     # linear2 (with bias)
    p["bl2"] = 0.1 * jax.random.normal(keys[13], (output_channels,), jnp.float32)
    return p


if __name__ == "__main__":
    key = jax.random.PRNGKey(0)
    kx, kp = jax.random.split(key)

    B, C, N = 2, 3, 16                        # small point cloud: 2 x 3 x 16
    x = jax.random.normal(kx, (B, C, N), dtype=jnp.float32)
    params = make_params(kp, emb_dims=64, output_channels=2)

    out = pointnet_forward(x, params)
    out = jax.block_until_ready(out)
    assert out.shape == (B, 2)
    print("KERNEL_OK")
</pallas_src>

<mosaic_0001>
module attributes {stable_mosaic.version = 11 : i64} {
  func.func @_pointnet_kernel(%arg0: i32, %arg1: i32, %arg2: memref<1x3x256xf32, #tpu.memory_space<vmem>>, %arg3: memref<64x3xf32, #tpu.memory_space<vmem>>, %arg4: memref<64x64xbf16, #tpu.memory_space<vmem>>, %arg5: memref<64x64xbf16, #tpu.memory_space<vmem>>, %arg6: memref<128x64xbf16, #tpu.memory_space<vmem>>, %arg7: memref<64x128xbf16, #tpu.memory_space<vmem>>, %arg8: memref<512x64xbf16, #tpu.memory_space<vmem>>, %arg9: memref<128x512xbf16, #tpu.memory_space<vmem>>, %arg10: memref<1024x1xf32, #tpu.memory_space<vmem>>, %arg11: memref<1x128x1xf32, #tpu.memory_space<vmem>>, %arg12: memref<64x1xf32, #tpu.memory_space<vmem>>) attributes {dimension_semantics = [#tpu.dimension_semantics<parallel>, #tpu.dimension_semantics<arbitrary>], iteration_bounds = array<i64: 2, 1>, scalar_prefetch = 0 : i64, scratch_operands = 1 : i64, tpu.core_type = #tpu.core_type<tc>, window_params = [{transform_indices = @transform_0, window_bounds = array<i64: 1, 3, 256>}, {pipeline_mode = #tpu.pipeline_mode<synchronous>, transform_indices = @transform_1, window_bounds = array<i64: 64, 3>}, {pipeline_mode = #tpu.pipeline_mode<synchronous>, transform_indices = @transform_2, window_bounds = array<i64: 64, 64>}, {pipeline_mode = #tpu.pipeline_mode<synchronous>, transform_indices = @transform_3, window_bounds = array<i64: 64, 64>}, {pipeline_mode = #tpu.pipeline_mode<synchronous>, transform_indices = @transform_4, window_bounds = array<i64: 128, 64>}, {pipeline_mode = #tpu.pipeline_mode<synchronous>, transform_indices = @transform_5, window_bounds = array<i64: 64, 128>}, {pipeline_mode = #tpu.pipeline_mode<synchronous>, transform_indices = @transform_6, window_bounds = array<i64: 512, 64>}, {pipeline_mode = #tpu.pipeline_mode<synchronous>, transform_indices = @transform_7, window_bounds = array<i64: 128, 512>}, {pipeline_mode = #tpu.pipeline_mode<synchronous>, transform_indices = @transform_8, window_bounds = array<i64: 1024, 1>}, {transform_indices = @transform_9, window_bounds = array<i64: 1, 128, 1>}]} {
    %c0 = arith.constant 0 : index
    %c0_0 = arith.constant 0 : index
    %c0_1 = arith.constant 0 : index
    %0 = vector.load %arg2[%c0, %c0_0, %c0_1] : memref<1x3x256xf32, #tpu.memory_space<vmem>>, vector<1x3x256xf32>
    %1 = vector.shape_cast %0 : vector<1x3x256xf32> to vector<3x256xf32>
    %c0_2 = arith.constant 0 : index
    %c0_3 = arith.constant 0 : index
    %2 = vector.load %arg3[%c0_2, %c0_3] : memref<64x3xf32, #tpu.memory_space<vmem>>, vector<64x3xf32>
    %3 = vector.extract_strided_slice %2 {offsets = [0, 0], sizes = [64, 1], strides = [1, 1]} : vector<64x3xf32> to vector<64x1xf32>
    %4 = vector.extract_strided_slice %1 {offsets = [0, 0], sizes = [1, 256], strides = [1, 1]} : vector<3x256xf32> to vector<1x256xf32>
    %5 = vector.broadcast %3 : vector<64x1xf32> to vector<64x256xf32>
    %6 = vector.broadcast %4 : vector<1x256xf32> to vector<64x256xf32>
    %7 = arith.mulf %5, %6 : vector<64x256xf32>
    %8 = vector.extract_strided_slice %2 {offsets = [0, 1], sizes = [64, 1], strides = [1, 1]} : vector<64x3xf32> to vector<64x1xf32>
    %9 = vector.extract_strided_slice %1 {offsets = [1, 0], sizes = [1, 256], strides = [1, 1]} : vector<3x256xf32> to vector<1x256xf32>
    %10 = vector.broadcast %8 : vector<64x1xf32> to vector<64x256xf32>
    %11 = vector.broadcast %9 : vector<1x256xf32> to vector<64x256xf32>
    %12 = arith.mulf %10, %11 : vector<64x256xf32>
    %13 = arith.addf %7, %12 : vector<64x256xf32>
    %14 = vector.extract_strided_slice %2 {offsets = [0, 2], sizes = [64, 1], strides = [1, 1]} : vector<64x3xf32> to vector<64x1xf32>
    %15 = vector.extract_strided_slice %1 {offsets = [2, 0], sizes = [1, 256], strides = [1, 1]} : vector<3x256xf32> to vector<1x256xf32>
    %16 = vector.broadcast %14 : vector<64x1xf32> to vector<64x256xf32>
    %17 = vector.broadcast %15 : vector<1x256xf32> to vector<64x256xf32>
    %18 = arith.mulf %16, %17 : vector<64x256xf32>
    %19 = arith.addf %13, %18 : vector<64x256xf32>
    %c0_4 = arith.constant 0 : index
    %c0_5 = arith.constant 0 : index
    %20 = vector.load %arg10[%c0_4, %c0_5] : memref<1024x1xf32, #tpu.memory_space<vmem>>, vector<64x1xf32>
    %21 = vector.broadcast %20 : vector<64x1xf32> to vector<64x256xf32>
    %22 = arith.addf %19, %21 : vector<64x256xf32>
    %cst = arith.constant 0.000000e+00 : f32
    %23 = vector.broadcast %cst : f32 to vector<64x256xf32>
    %24 = arith.maximumf %22, %23 : vector<64x256xf32>
    %c0_6 = arith.constant 0 : index
    %c0_7 = arith.constant 0 : index
    %25 = vector.load %arg4[%c0_6, %c0_7] : memref<64x64xbf16, #tpu.memory_space<vmem>>, vector<64x64xbf16>
    %26 = arith.truncf %24 : vector<64x256xf32> to vector<64x256xbf16>
    %cst_8 = arith.constant dense<0.000000e+00> : vector<64x256xf32>
    %27 = tpu.matmul %25, %26, %cst_8 {dimension_numbers = #tpu.dot_dimension_numbers<[1], [0], [0], [1], [0, 0, 1, 1], [], []>} : vector<64x64xbf16>, vector<64x256xbf16>, vector<64x256xf32> -> vector<64x256xf32>
    %c64 = arith.constant 64 : index
    %c0_9 = arith.constant 0 : index
    %28 = vector.load %arg10[%c64, %c0_9] : memref<1024x1xf32, #tpu.memory_space<vmem>>, vector<64x1xf32>
    %29 = vector.broadcast %28 : vector<64x1xf32> to vector<64x256xf32>
    %30 = arith.addf %27, %29 : vector<64x256xf32>
    %cst_10 = arith.constant 0.000000e+00 : f32
    %31 = vector.broadcast %cst_10 : f32 to vector<64x256xf32>
    %32 = arith.maximumf %30, %31 : vector<64x256xf32>
    %c0_11 = arith.constant 0 : index
    %c0_12 = arith.constant 0 : index
    %33 = vector.load %arg5[%c0_11, %c0_12] : memref<64x64xbf16, #tpu.memory_space<vmem>>, vector<64x64xbf16>
    %34 = arith.truncf %32 : vector<64x256xf32> to vector<64x256xbf16>
    %cst_13 = arith.constant dense<0.000000e+00> : vector<64x256xf32>
    %35 = tpu.matmul %33, %34, %cst_13 {dimension_numbers = #tpu.dot_dimension_numbers<[1], [0], [0], [1], [0, 0, 1, 1], [], []>} : vector<64x64xbf16>, vector<64x256xbf16>, vector<64x256xf32> -> vector<64x256xf32>
    %c128 = arith.constant 128 : index
    %c0_14 = arith.constant 0 : index
    %36 = vector.load %arg10[%c128, %c0_14] : memref<1024x1xf32, #tpu.memory_space<vmem>>, vector<64x1xf32>
    %37 = vector.broadcast %36 : vector<64x1xf32> to vector<64x256xf32>
    %38 = arith.addf %35, %37 : vector<64x256xf32>
    %cst_15 = arith.constant 0.000000e+00 : f32
    %39 = vector.broadcast %cst_15 : f32 to vector<64x256xf32>
    %40 = arith.maximumf %38, %39 : vector<64x256xf32>
    %c0_16 = arith.constant 0 : index
    %c0_17 = arith.constant 0 : index
    %41 = vector.load %arg6[%c0_16, %c0_17] : memref<128x64xbf16, #tpu.memory_space<vmem>>, vector<128x64xbf16>
    %42 = arith.truncf %40 : vector<64x256xf32> to vector<64x256xbf16>
    %cst_18 = arith.constant dense<0.000000e+00> : vector<128x256xf32>
    %43 = tpu.matmul %41, %42, %cst_18 {dimension_numbers = #tpu.dot_dimension_numbers<[1], [0], [0], [1], [0, 0, 1, 1], [], []>} : vector<128x64xbf16>, vector<64x256xbf16>, vector<128x256xf32> -> vector<128x256xf32>
    %c192 = arith.constant 192 : index
    %c0_19 = arith.constant 0 : index
    %44 = vector.load %arg10[%c192, %c0_19] : memref<1024x1xf32, #tpu.memory_space<vmem>>, vector<128x1xf32>
    %45 = vector.broadcast %44 : vector<128x1xf32> to vector<128x256xf32>
    %46 = arith.addf %43, %45 : vector<128x256xf32>
    %cst_20 = arith.constant 0.000000e+00 : f32
    %47 = vector.broadcast %cst_20 : f32 to vector<128x256xf32>
    %48 = arith.maximumf %46, %47 : vector<128x256xf32>
    %c0_21 = arith.constant 0 : index
    %c0_22 = arith.constant 0 : index
    %49 = vector.load %arg7[%c0_21, %c0_22] : memref<64x128xbf16, #tpu.memory_space<vmem>>, vector<64x128xbf16>
    %50 = arith.truncf %48 : vector<128x256xf32> to vector<128x256xbf16>
    %cst_23 = arith.constant dense<0.000000e+00> : vector<64x256xf32>
    %51 = tpu.matmul %49, %50, %cst_23 {dimension_numbers = #tpu.dot_dimension_numbers<[1], [0], [0], [1], [0, 0, 1, 1], [], []>} : vector<64x128xbf16>, vector<128x256xbf16>, vector<64x256xf32> -> vector<64x256xf32>
    %c320 = arith.constant 320 : index
    %c0_24 = arith.constant 0 : index
    %52 = vector.load %arg10[%c320, %c0_24] : memref<1024x1xf32, #tpu.memory_space<vmem>>, vector<64x1xf32>
    %53 = vector.broadcast %52 : vector<64x1xf32> to vector<64x256xf32>
    %54 = arith.addf %51, %53 : vector<64x256xf32>
    %cst_25 = arith.constant 0.000000e+00 : f32
    %55 = vector.broadcast %cst_25 : f32 to vector<64x256xf32>
    %56 = arith.maximumf %54, %55 : vector<64x256xf32>
    %cst_26 = arith.constant dense<0xFF800000> : vector<64xf32>
    %57 = vector.multi_reduction <maximumf>, %56, %cst_26 [1] : vector<64x256xf32> to vector<64xf32>
    %58 = vector.shape_cast %57 : vector<64xf32> to vector<64x1xf32>
    %c0_i32 = arith.constant 0 : i32
    %59 = arith.cmpi eq, %arg1, %c0_i32 : i32
    %60 = arith.extui %59 : i1 to i32
    %c0_i32_27 = arith.constant 0 : i32
    %61 = arith.cmpi ne, %60, %c0_i32_27 : i32
    scf.if %61 {
      %c0_32 = arith.constant 0 : index
      %c0_33 = arith.constant 0 : index
      %68 = vector.load %arg12[%c0_32, %c0_33] : memref<64x1xf32, #tpu.memory_space<vmem>>, vector<64x1xf32>
      tpu.vector_store %arg12[%c0_32, %c0_33], %58 {strides = array<i32>} : memref<64x1xf32, #tpu.memory_space<vmem>>, vector<64x1xf32>,
    } else {
    }
    %c0_i32_28 = arith.constant 0 : i32
    %62 = arith.cmpi sgt, %arg1, %c0_i32_28 : i32
    %63 = arith.extui %62 : i1 to i32
    %c0_i32_29 = arith.constant 0 : i32
    %64 = arith.cmpi ne, %63, %c0_i32_29 : i32
    scf.if %64 {
      %c0_32 = arith.constant 0 : index
      %c0_33 = arith.constant 0 : index
      %68 = vector.load %arg12[%c0_32, %c0_33] : memref<64x1xf32, #tpu.memory_space<vmem>>, vector<64x1xf32>
      %69 = arith.maximumf %68, %58 : vector<64x1xf32>
      %c0_34 = arith.constant 0 : index
      %c0_35 = arith.constant 0 : index
      %70 = vector.load %arg12[%c0_34, %c0_35] : memref<64x1xf32, #tpu.memory_space<vmem>>, vector<64x1xf32>
      tpu.vector_store %arg12[%c0_34, %c0_35], %69 {strides = array<i32>} : memref<64x1xf32, #tpu.memory_space<vmem>>, vector<64x1xf32>,
    } else {
    }
    %c0_i32_30 = arith.constant 0 : i32
    %65 = arith.cmpi eq, %arg1, %c0_i32_30 : i32
    %66 = arith.extui %65 : i1 to i32
    %c0_i32_31 = arith.constant 0 : i32
    %67 = arith.cmpi ne, %66, %c0_i32_31 : i32
    scf.if %67 {
      %c0_32 = arith.constant 0 : index
      %c0_33 = arith.constant 0 : index
      %68 = vector.load %arg12[%c0_32, %c0_33] : memref<64x1xf32, #tpu.memory_space<vmem>>, vector<64x1xf32>
      %69 = vector.shape_cast %68 : vector<64x1xf32> to vector<64x1xf32>
      %70 = vector.broadcast %69 : vector<64x1xf32> to vector<64x128xf32>
      %71 = arith.truncf %70 : vector<64x128xf32> to vector<64x128xbf16>
      %c0_34 = arith.constant 0 : index
      %c0_35 = arith.constant 0 : index
      %72 = vector.load %arg8[%c0_34, %c0_35] : memref<512x64xbf16, #tpu.memory_space<vmem>>, vector<512x64xbf16>
      %cst_36 = arith.constant dense<0.000000e+00> : vector<512x128xf32>
      %73 = tpu.matmul %72, %71, %cst_36 {dimension_numbers = #tpu.dot_dimension_numbers<[1], [0], [0], [1], [0, 0, 1, 1], [], []>} : vector<512x64xbf16>, vector<64x128xbf16>, vector<512x128xf32> -> vector<512x128xf32>
      %c384 = arith.constant 384 : index
      %c0_37 = arith.constant 0 : index
      %74 = vector.load %arg10[%c384, %c0_37] : memref<1024x1xf32, #tpu.memory_space<vmem>>, vector<512x1xf32>
      %75 = vector.broadcast %74 : vector<512x1xf32> to vector<512x128xf32>
      %76 = arith.addf %73, %75 : vector<512x128xf32>
      %cst_38 = arith.constant 0.000000e+00 : f32
      %77 = vector.broadcast %cst_38 : f32 to vector<512x128xf32>
      %78 = arith.maximumf %76, %77 : vector<512x128xf32>
      %c0_39 = arith.constant 0 : index
      %c0_40 = arith.constant 0 : index
      %79 = vector.load %arg9[%c0_39, %c0_40] : memref<128x512xbf16, #tpu.memory_space<vmem>>, vector<128x512xbf16>
      %80 = arith.truncf %78 : vector<512x128xf32> to vector<512x128xbf16>
      %cst_41 = arith.constant dense<0.000000e+00> : vector<128x128xf32>
      %81 = tpu.matmul %79, %80, %cst_41 {dimension_numbers = #tpu.dot_dimension_numbers<[1], [0], [0], [1], [0, 0, 1, 1], [], []>} : vector<128x512xbf16>, vector<512x128xbf16>, vector<128x128xf32> -> vector<128x128xf32>
      %82 = vector.extract_strided_slice %81 {offsets = [0, 0], sizes = [128, 1], strides = [1, 1]} : vector<128x128xf32> to vector<128x1xf32>
      %c896 = arith.constant 896 : index
      %c0_42 = arith.constant 0 : index
      %83 = vector.load %arg10[%c896, %c0_42] : memref<1024x1xf32, #tpu.memory_space<vmem>>, vector<128x1xf32>
      %84 = arith.addf %82, %83 : vector<128x1xf32>
      %c0_43 = arith.constant 0 : index
      %c0_44 = arith.constant 0 : index
      %c0_45 = arith.constant 0 : index
      %85 = vector.load %arg11[%c0_43, %c0_44, %c0_45] : memref<1x128x1xf32, #tpu.memory_space<vmem>>, vector<1x128x1xf32>
      %86 = vector.shape_cast %85 : vector<1x128x1xf32> to vector<128x1xf32>
      %87 = vector.shape_cast %84 : vector<128x1xf32> to vector<1x128x1xf32>
      tpu.vector_store %arg11[%c0_43, %c0_44, %c0_45], %87 {strides = array<i32>} : memref<1x128x1xf32, #tpu.memory_space<vmem>>, vector<1x128x1xf32>,
    } else {
    }
    return
  }
  func.func @transform_0(%arg0: i32, %arg1: i32) -> (i32, i32, i32) {
    %c0_i32 = arith.constant 0 : i32
    %c0_i32_0 = arith.constant 0 : i32
    return %arg0, %c0_i32, %arg1 : i32, i32, i32
  }
  func.func @transform_1(%arg0: i32, %arg1: i32) -> (i32, i32) {
    %c0_i32 = arith.constant 0 : i32
    %c0_i32_0 = arith.constant 0 : i32
    %c0_i32_1 = arith.constant 0 : i32
    return %c0_i32, %c0_i32_0 : i32, i32
  }
  func.func @transform_2(%arg0: i32, %arg1: i32) -> (i32, i32) {
    %c0_i32 = arith.constant 0 : i32
    %c0_i32_0 = arith.constant 0 : i32
    %c0_i32_1 = arith.constant 0 : i32
    return %c0_i32, %c0_i32_0 : i32, i32
  }
  func.func @transform_3(%arg0: i32, %arg1: i32) -> (i32, i32) {
    %c0_i32 = arith.constant 0 : i32
    %c0_i32_0 = arith.constant 0 : i32
    %c0_i32_1 = arith.constant 0 : i32
    return %c0_i32, %c0_i32_0 : i32, i32
  }
  func.func @transform_4(%arg0: i32, %arg1: i32) -> (i32, i32) {
    %c0_i32 = arith.constant 0 : i32
    %c0_i32_0 = arith.constant 0 : i32
    %c0_i32_1 = arith.constant 0 : i32
    return %c0_i32, %c0_i32_0 : i32, i32
  }
  func.func @transform_5(%arg0: i32, %arg1: i32) -> (i32, i32) {
    %c0_i32 = arith.constant 0 : i32
    %c0_i32_0 = arith.constant 0 : i32
    %c0_i32_1 = arith.constant 0 : i32
    return %c0_i32, %c0_i32_0 : i32, i32
  }
  func.func @transform_6(%arg0: i32, %arg1: i32) -> (i32, i32) {
    %c0_i32 = arith.constant 0 : i32
    %c0_i32_0 = arith.constant 0 : i32
    %c0_i32_1 = arith.constant 0 : i32
    return %c0_i32, %c0_i32_0 : i32, i32
  }
  func.func @transform_7(%arg0: i32, %arg1: i32) -> (i32, i32) {
    %c0_i32 = arith.constant 0 : i32
    %c0_i32_0 = arith.constant 0 : i32
    %c0_i32_1 = arith.constant 0 : i32
    return %c0_i32, %c0_i32_0 : i32, i32
  }
  func.func @transform_8(%arg0: i32, %arg1: i32) -> (i32, i32) {
    %c0_i32 = arith.constant 0 : i32
    %c0_i32_0 = arith.constant 0 : i32
    %c0_i32_1 = arith.constant 0 : i32
    return %c0_i32, %c0_i32_0 : i32, i32
  }
  func.func @transform_9(%arg0: i32, %arg1: i32) -> (i32, i32, i32) {
    %c0_i32 = arith.constant 0 : i32
    %c0_i32_0 = arith.constant 0 : i32
    %c0_i32_1 = arith.constant 0 : i32
    return %arg0, %c0_i32, %c0_i32_0 : i32, i32, i32
  }
}

</mosaic_0001>

<bundles_post_ra>
// kernel: tpu_custom_call.1
= control target key start
LH: loop header
LB: loop body
LE: loop exit
PB: predicated region body
PF: predicated region fallthrough
CT: control target
= control target key end

     0   :  { %s3917_s30 = smov 0   ;;  %s3919_s10 = smov 0   ;;  %s5188_s0 = inlined_call_operand.vmem [shape: f32[2,3,256], index: 0, kind: input, shape index: {}]   ;;  %s5189_s1 = inlined_call_operand.vmem [shape: f32[64,3], index: 1, kind: input, shape index: {}]   ;;  %s5190_s2 = inlined_call_operand.vmem [shape: bf16[64,64], index: 2, kind: input, shape index: {}]   ;;  %s5191_s3 = inlined_call_operand.vmem [shape: bf16[64,64], index: 3, kind: input, shape index: {}]   ;;  %s5192_s4 = inlined_call_operand.vmem [shape: bf16[128,64], index: 4, kind: input, shape index: {}]   ;;  %s5193_s5 = inlined_call_operand.vmem [shape: bf16[64,128], index: 5, kind: input, shape index: {}]   ;;  %s5194_s6 = inlined_call_operand.vmem [shape: bf16[512,64], index: 6, kind: input, shape index: {}]   ;;  %s5195_s7 = inlined_call_operand.vmem [shape: bf16[128,512], index: 7, kind: input, shape index: {}]   ;;  %s5196_s8 = inlined_call_operand.vmem [shape: f32[1024,1], index: 8, kind: input, shape index: {}]   ;;  %s5197_s9 = inlined_call_operand.vmem [shape: f32[2,128,1], index: 9, kind: output, shape index: {}]  }
   0x1   :  { %s3921_s11 = smov 0  }
   0x2 LB: > { %s31_s12 = sadd.s32 1, %s3858_s10  ;;  %p3293_p0 = scmp.ge.s32.totalorder %s3862_s11, 1  ;;  %s3862_s11 = sphi %s3921_s11, %s19_s11   ;;  %s3858_s10 = sphi %s3919_s10, %s5251_s10   ;;  %s3854_s30 = sphi %s3917_s30, %s5250_s30  }
   0x3   : > { %p33_p1 = scmp.ge.s32.totalorder %s31_s12, 2  ;;  %p306_p2 = scmp.lt.s32.totalorder %s3862_s11, 3 }
   0x5   : > { %s5253_s12 = smov (%p33_p1, %s31_s12), 0  ;;  %p307_p3 = pnand %p3293_p0, %p306_p2 }
   0x7   : > { %310 = sbr.rel (%p307_p3) target bundleno = 2141 (0x85d), region = 56 }
   0xc   : > { %v369_v0 = vld [vmem:[%s5189_s1 + $0x30] sm:$0xff]  ;;  %v3864_v1 = vmov 2   ;;  %v3865_v2 = vmov 1   ;;  %v370_v3 = vld [vmem:[%s5189_s1 + $0x38] sm:$0xff]  ;;  %v367_v4 = vld [vmem:[%s5189_s1 + $0x20] sm:$0xff]  ;;  %v3866_v5 = vmov 0   ;;  %v412_v54 = vlaneseq }
   0xd   : > { %3706 = vset.pattern.permute.xlu0 %v3864_v1  ;;  %3705 = vset.pattern.permute.xlu1 %v3865_v2  ;;  %v366_v6 = vld [vmem:[%s5189_s1 + $0x18] sm:$0xff]  ;;  %v365_v7 = vld [vmem:[%s5189_s1 + $0x10] sm:$0xff]  ;;  %v364_v8 = vld [vmem:[%s5189_s1 + $0x8] sm:$0xff]  ;;  %p347_p4 = scmp.lt.s32.totalorder %s3854_s30, 1  ;;  %vm774_vm0 = vcmask 523264   ;;  %vm1603_vm1 = vcmask 7168  }
   0xe   : > { %553 = vperm.xlu0 %3706, %v369_v0   ;;  %471 = vperm.xlu1 %3705, %v369_v0   ;;  %v368_v9 = vld [vmem:[%s5189_s1 + $0x28] sm:$0xff]  ;;  %v616_v10 = vld [vmem:[%s5196_s8 + $0x30] sm:$0xff]  ;;  %v617_v11 = vld [vmem:[%s5196_s8 + $0x38] sm:$0xff]  ;;  %v413_v58 = vshrl.u32 %v412_v54, 7 }
   0xf   : > { %819 = vmatprep.mubr.bf16.mxu0 %v3866_v5  ;;  %839 = vmatprep.mubr.bf16.mxu1 %v3866_v5  ;;  %v363_v12 = vld [vmem:[%s5189_s1] sm:$0xff]  ;;  %v612_v13 = vld [vmem:[%s5196_s8 + $0x10] sm:$0xff]  ;;  %v611_v14 = vld [vmem:[%s5196_s8 + $0x8] sm:$0xff]  ;;  %s5255_s30 = smov (!%p347_p4, %s3854_s30), 1 }
  0x10   : > { %v713_v15 = vld [vmem:[%s5196_s8 + $0x78] sm:$0xff]  ;;  %v711_v16 = vld [vmem:[%s5196_s8 + $0x68] sm:$0xff]  ;;  %v614_v17 = vld [vmem:[%s5196_s8 + $0x20] sm:$0xff]  ;;  %s3432_s22 = sshll.u32 %s5255_s30, 3  ;;  %v480_v61 = vsub.s32 1, %v413_v58  ;;  %v484_v62 = vsub.s32 5, %v413_v58 }
  0x11   : > { %v709_v18 = vld [vmem:[%s5196_s8 + $0x58] sm:$0xff]  ;;  %v615_v19 = vld [vmem:[%s5196_s8 + $0x28] sm:$0xff]  ;;  %v610_v28 = vld [vmem:[%s5196_s8] sm:$0xff]  ;;  %s354_s27 = scalar_lea.vmem %s5188_s0, %s3432_s22  ;;  %v414_v63 = vsub.s32 0, %v413_v58  ;;  %s3433_s17 = sshll.u32 %s5255_s30, 7 }
  0x12   : > { %475 = vperm.xlu1 %3705, %v370_v3   ;;  %545 = vperm.xlu0 %3706, %v367_v4   ;;  %v707_v20 = vld [vmem:[%s5196_s8 + $0x48] sm:$0xff]  ;;  %v899_v21 = vld [vmem:[%s5196_s8 + $0xb8] sm:$0xff]  ;;  %v712_v30 = vld [vmem:[%s5196_s8 + $0x70] sm:$0xff]  ;;  %s5087_s22 = scalar_lea.vmem %s5197_s9, %s3433_s17 }
  0x13   : > { %v897_v22 = vld [vmem:[%s5196_s8 + $0xa8] sm:$0xff]  ;;  %v895_v23 = vld [vmem:[%s5196_s8 + $0x98] sm:$0xff]  ;;  %v710_v32 = vld [vmem:[%s5196_s8 + $0x60] sm:$0xff] }
  0x14   : > { %v893_v24 = vld [vmem:[%s5196_s8 + $0x88] sm:$0xff]  ;;  %v1100_v25 = vld [vmem:[%s5196_s8 + $0x138] sm:$0xff]  ;;  %v708_v34 = vld [vmem:[%s5196_s8 + $0x50] sm:$0xff] }
  0x15   : > { %v613_v26 = vld [vmem:[%s5196_s8 + $0x18] sm:$0xff]  ;;  %v1098_v27 = vld [vmem:[%s5196_s8 + $0x128] sm:$0xff]  ;;  %v706_v36 = vld [vmem:[%s5196_s8 + $0x40] sm:$0xff] }
  0x16   : > { %3707 = vset.pattern.permute.xlu1 %v3864_v1  ;;  %541 = vperm.xlu0 %3706, %v366_v6   ;;  %v1096_v29 = vld [vmem:[%s5196_s8 + $0x118] sm:$0xff]  ;;  %v1094_v31 = vld [vmem:[%s5196_s8 + $0x108] sm:$0xff]  ;;  %v898_v38 = vld [vmem:[%s5196_s8 + $0xb0] sm:$0xff] }
  0x17   : > { %557 = vperm.xlu1 %3707, %v370_v3   ;;  %v1092_v33 = vld [vmem:[%s5196_s8 + $0xf8] sm:$0xff]  ;;  %v1090_v35 = vld [vmem:[%s5196_s8 + $0xe8] sm:$0xff]  ;;  %v896_v40 = vld [vmem:[%s5196_s8 + $0xa0] sm:$0xff] }
  0x18   : > { %v1088_v37 = vld [vmem:[%s5196_s8 + $0xd8] sm:$0xff]  ;;  %v1086_v39 = vld [vmem:[%s5196_s8 + $0xc8] sm:$0xff]  ;;  %v894_v42 = vld [vmem:[%s5196_s8 + $0x90] sm:$0xff] }
  0x19   : > { %v1421_v41 = vld [vmem:[%s5196_s8 + $0x178] sm:$0xff]  ;;  %v1419_v43 = vld [vmem:[%s5196_s8 + $0x168] sm:$0xff]  ;;  %v892_v44 = vld [vmem:[%s5196_s8 + $0x80] sm:$0xff] }
  0x1a   : > { %3714 = vset.pattern.permute.xlu0 %v3865_v2  ;;  %v1417_v45 = vld [vmem:[%s5196_s8 + $0x158] sm:$0xff]  ;;  %v1099_v46 = vld [vmem:[%s5196_s8 + $0x130] sm:$0xff]  ;;  %v1415_v49 = vld [vmem:[%s5196_s8 + $0x148] sm:$0xff] }
  0x1b   : > { %3708 = vset.pattern.permute.xlu1 %v3866_v5  ;;  %455 = vperm.xlu0 %3714, %v365_v7   ;;  %v1097_v50 = vld [vmem:[%s5196_s8 + $0x120] sm:$0xff]  ;;  %v1095_v53 = vld [vmem:[%s5196_s8 + $0x110] sm:$0xff] }
  0x1c   : > { %393 = vperm.xlu1 %3708, %v367_v4   ;;  %v1093_v57 = vld [vmem:[%s5196_s8 + $0x100] sm:$0xff]  ;;  %v1091_v60 = vld [vmem:[%s5196_s8 + $0xf0] sm:$0xff] }
  0x1f   : > { %451 = vperm.xlu0 %3714, %v364_v8  }
  0x20   : > { %3709 = vset.pattern.permute.xlu1 %v3865_v2 }
  0x21   : > { %463 = vperm.xlu1 %3709, %v367_v4   ;;  %v566_v4 = vsub.s32 6, %v413_v58 }
  0x23   : > { %3717 = vset.pattern.permute.xlu0 %v3866_v5 }
  0x24   : > { %403 = vperm.xlu0 %3717, %v369_v0   ;;  %v418_v0 = vsub.s32 4, %v413_v58 }
  0x25   : > { %467 = vperm.xlu1 %3709, %v368_v9  }
  0x28   : > { %408 = vperm.xlu0 %3717, %v370_v3   ;;  %v562_v3 = vsub.s32 2, %v413_v58 }
  0x29   : > { %3710 = vset.pattern.permute.xlu1 %v3864_v1 }
  0x2a   : > { %549 = vperm.xlu1 %3710, %v368_v9  }
  0x2c   : > { %398 = vperm.xlu0 %3717, %v368_v9  }
  0x2e   : > { %3711 = vset.pattern.permute.xlu1 %v3866_v5 }
  0x2f   : > { %650 = vperm.xlu1 %3711, %v616_v10  }
  0x30   : > { %655 = vperm.xlu0 %3717, %v617_v11  }
  0x33   : > { %383 = vperm.xlu1 %3711, %v365_v7  }
  0x34   : > { %373 = vperm.xlu0 %3717, %v363_v12  }
  0x37   : > { %388 = vperm.xlu1 %3711, %v366_v6  }
  0x38   : > { %630 = vperm.xlu0 %3717, %v612_v13  }
  0x3b   : > { %3712 = vset.pattern.permute.xlu1 %v3865_v2 }
  0x3c   : > { %459 = vperm.xlu1 %3712, %v366_v6   ;;  %625 = vperm.xlu0 %3717, %v611_v14  }
  0x40   : > { %3713 = vset.pattern.permute.xlu1 %v3864_v1  ;;  %751 = vperm.xlu0 %3717, %v713_v15   ;;  %v1087_v15 = vld [vmem:[%s5196_s8 + $0xd0] sm:$0xff] }
  0x41   : > { %537 = vperm.xlu1 %3713, %v365_v7   ;;  %v1089_v7 = vld [vmem:[%s5196_s8 + $0xe0] sm:$0xff] }
  0x44   : > { %741 = vperm.xlu0 %3717, %v711_v16  }
  0x45   : > { %3715 = vset.pattern.permute.xlu1 %v3866_v5 }
  0x46   : > { %640 = vperm.xlu1 %3715, %v614_v17  }
  0x48   : > { %731 = vperm.xlu0 %3717, %v709_v18  }
  0x4a   : > { %645 = vperm.xlu1 %3715, %v615_v19  }
  0x4c   : > { %721 = vperm.xlu0 %3717, %v707_v20  }
  0x4e   : > { %378 = vperm.xlu1 %3715, %v364_v8  }
  0x50   : > { %937 = vperm.xlu0 %3717, %v899_v21  }
  0x52   : > { %3716 = vset.pattern.permute.xlu1 %v3865_v2  ;;  %v362_v2 = vld [vmem:[%s354_s27] sm:$0x77] }
  0x53   : > { %447 = vperm.xlu1 %3716, %v363_v12   ;;  %v485_v9 = vrot.slane %v362_v2, %v484_v62  ;;  %v415_v10 = vrot.slane %v362_v2, %v414_v63  ;;  %v419_v11 = vrot.slane %v362_v2, %v418_v0  ;;  %v563_v13 = vrot.slane %v362_v2, %v562_v3 }
  0x54   : > { %927 = vperm.xlu0 %3717, %v897_v22   ;;  %v567_v14 = vrot.slane %v362_v2, %v566_v4 }
  0x55   : > { %v4129_v17 = vrot.slane %v485_v9, %v480_v61  ;;  %v4131_v18 = vrot.slane %v415_v10, %v414_v63  ;;  %v4133_v19 = vrot.slane %v419_v11, %v414_v63 }
  0x57   : > { %3718 = vset.pattern.permute.xlu1 %v3864_v1 }
  0x58   : > { %917 = vperm.xlu0 %3717, %v895_v23   ;;  %529 = vperm.xlu1 %3718, %v363_v12  }
  0x5c   : > { %907 = vperm.xlu0 %3717, %v893_v24   ;;  %533 = vperm.xlu1 %3718, %v364_v8   ;;  %v481_v8 = vrot.slane %v362_v2, %v480_v61  ;;  %v1085_v24 = vld [vmem:[%s5196_s8 + $0xc0] sm:$0xff] }
  0x5e   : > { %v4127_v16 = vrot.slane %v481_v8, %v480_v61 }
  0x60   : > { %1178 = vperm.xlu0 %3717, %v1100_v25   ;;  %3719 = vset.pattern.permute.xlu1 %v3866_v5 }
  0x61   : > { %635 = vperm.xlu1 %3719, %v613_v26  }
  0x64   : > { %1168 = vperm.xlu0 %3717, %v1098_v27   ;;  %v4144_v27 = vrot.slane %v563_v13, %v562_v3 }
  0x65   : > { %620 = vperm.xlu1 %3719, %v610_v28   ;;  %v4146_v28 = vrot.slane %v567_v14, %v562_v3 }
  0x68   : > { %1158 = vperm.xlu0 %3717, %v1096_v29  }
  0x69   : > { %746 = vperm.xlu1 %3719, %v712_v30  }
  0x6c   : > { %1148 = vperm.xlu0 %3717, %v1094_v31  }
  0x6d   : > { %736 = vperm.xlu1 %3719, %v710_v32  }
  0x70   : > { %1138 = vperm.xlu0 %3717, %v1092_v33  }
  0x71   : > { %726 = vperm.xlu1 %3719, %v708_v34  }
  0x74   : > { %1128 = vperm.xlu0 %3717, %v1090_v35  }
  0x75   : > { %716 = vperm.xlu1 %3719, %v706_v36  }
  0x78   : > { %1118 = vperm.xlu0 %3717, %v1088_v37  }
  0x79   : > { %932 = vperm.xlu1 %3719, %v898_v38  }
  0x7c   : > { %1108 = vperm.xlu0 %3717, %v1086_v39  }
  0x7d   : > { %922 = vperm.xlu1 %3719, %v896_v40  }
  0x80   : > { %1459 = vperm.xlu0 %3717, %v1421_v41   ;;  %v1420_v41 = vld [vmem:[%s5196_s8 + $0x170] sm:$0xff] }
  0x81   : > { %912 = vperm.xlu1 %3719, %v894_v42  }
  0x84   : > { %1449 = vperm.xlu0 %3717, %v1419_v43  }
  0x85   : > { %902 = vperm.xlu1 %3719, %v892_v44  }
  0x88   : > { %1439 = vperm.xlu0 %3717, %v1417_v45  }
  0x89   : > { %v472_v47 = vpop.permute.xlu1 %471  ;;  %1173 = vperm.xlu1 %3719, %v1099_v46   ;;  %v554_v48 = vpop.permute.xlu0 %553 }
  0x8a   : > { %v508_v25 = vmul.f32 %v4127_v16, %v472_v47  ;;  %v509_v26 = vmul.f32 %v4129_v17, %v472_v47  ;;  %v590_v34 = vmul.f32 %v4144_v27, %v554_v48  ;;  %v591_v35 = vmul.f32 %v4146_v28, %v554_v48 }
  0x8c   : > { %1429 = vperm.xlu0 %3717, %v1415_v49  }
  0x8d   : > { %v476_v51 = vpop.permute.xlu1 %475  ;;  %1163 = vperm.xlu1 %3719, %v1097_v50   ;;  %v4093_v52 = vpop.permute.xlu0 %545  ;;  %v1418_v50 = vld [vmem:[%s5196_s8 + $0x160] sm:$0xff] }
  0x8e   : > { %v510_v30 = vmul.f32 %v4127_v16, %v476_v51  ;;  %v511_v31 = vmul.f32 %v4129_v17, %v476_v51 }
  0x91   : > { %1153 = vperm.xlu1 %3719, %v1095_v53   ;;  %v4101_v55 = vpop.permute.xlu0 %541 }
  0x92   : > { %v558_v56 = vpop.permute.xlu1 %557 }
  0x93   : > { %v592_v43 = vmul.f32 %v4144_v27, %v558_v56  ;;  %v593_v44 = vmul.f32 %v4146_v28, %v558_v56  ;;  %v1416_v56 = vld [vmem:[%s5196_s8 + $0x150] sm:$0xff] }
  0x95   : > { %1143 = vperm.xlu1 %3719, %v1093_v57  }
  0x96   : > { %v4110_v59 = vpop.permute.xlu0 %455 }
  0x97   : > { %v4115_v1 = vpop.permute.xlu1 %393 }
  0x98   : > { %v438_v11 = vmul.f32 %v4131_v18, %v4115_v1  ;;  %v439_v13 = vmul.f32 %v4133_v19, %v4115_v1 }
  0x99   : > { %1133 = vperm.xlu1 %3719, %v1091_v60  }
  0x9a   : > { %v4117_v6 = vpop.permute.xlu0 %451 }
  0x9c   : > { %v4122_v12 = vpop.permute.xlu1 %463 }
  0x9d   : > { %1123 = vperm.xlu1 %3719, %v1089_v7   ;;  %v1414_v7 = vld [vmem:[%s5196_s8 + $0x140] sm:$0xff]  ;;  %v504_v9 = vmul.f32 %v4127_v16, %v4122_v12  ;;  %v505_v10 = vmul.f32 %v4129_v17, %v4122_v12 }
  0x9f   : > { %v404_v20 = vpop.permute.xlu0 %403 }
  0xa0   : > { %v4135_v21 = vpop.permute.xlu1 %467  ;;  %v442_v22 = vmul.f32 %v4131_v18, %v404_v20  ;;  %v443_v23 = vmul.f32 %v4133_v19, %v404_v20 }
  0xa1   : > { %1113 = vperm.xlu1 %3719, %v1087_v15   ;;  %v506_v12 = vmul.f32 %v4127_v16, %v4135_v21 }
  0xa2   : > { %v524_v36 = vadd.f32 %v508_v25, %v442_v22  ;;  %v525_v37 = vadd.f32 %v509_v26, %v443_v23  ;;  %v586_v22 = vmul.f32 %v4144_v27, %v4093_v52  ;;  %v587_v23 = vmul.f32 %v4146_v28, %v4093_v52 }
  0xa3   : > { %v409_v29 = vpop.permute.xlu0 %408  ;;  %v521_v25 = vadd.f32 %v505_v10, %v439_v13  ;;  %v507_v26 = vmul.f32 %v4129_v17, %v4135_v21 }
  0xa4   : > { %v444_v32 = vmul.f32 %v4131_v18, %v409_v29  ;;  %v445_v33 = vmul.f32 %v4133_v19, %v409_v29  ;;  %v606_v45 = vadd.f32 %v590_v34, %v524_v36  ;;  %v607_v46 = vadd.f32 %v591_v35, %v525_v37 }
  0xa5   : > { %v550_v38 = vpop.permute.xlu1 %549  ;;  %1103 = vperm.xlu1 %3719, %v1085_v24   ;;  %v520_v24 = vadd.f32 %v504_v9, %v438_v11  ;;  %v603_v34 = vadd.f32 %v587_v23, %v521_v25  ;;  %v499_v11 = vmul.f32 %v4129_v17, %v4117_v6 }
  0xa6   : > { %v526_v39 = vadd.f32 %v510_v30, %v444_v32  ;;  %v527_v40 = vadd.f32 %v511_v31, %v445_v33  ;;  %v588_v31 = vmul.f32 %v4144_v27, %v550_v38  ;;  %v589_v32 = vmul.f32 %v4146_v28, %v550_v38 }
  0xa7   : > { %v399_v42 = vpop.permute.xlu0 %398  ;;  %v602_v33 = vadd.f32 %v586_v22, %v520_v24 }
  0xa8   : > { %v608_v48 = vadd.f32 %v592_v43, %v526_v39  ;;  %v609_v49 = vadd.f32 %v593_v44, %v527_v40  ;;  %v440_v14 = vmul.f32 %v4131_v18, %v399_v42  ;;  %v441_v15 = vmul.f32 %v4133_v19, %v399_v42 }
  0xa9   : > { %1454 = vperm.xlu1 %3719, %v1420_v41  }
  0xaa   : > { %v651_v47 = vpop.permute.xlu1 %650  ;;  %v522_v1 = vadd.f32 %v506_v12, %v440_v14  ;;  %v523_v29 = vadd.f32 %v507_v26, %v441_v15 }
  0xab   : > { %v670_v51 = vadd.f32 %v651_v47, %v606_v45  ;;  %v671_v53 = vadd.f32 %v651_v47, %v607_v46  ;;  %v656_v54 = vpop.permute.xlu0 %655 }
  0xac   : > { %v672_v57 = vadd.f32 %v656_v54, %v608_v48  ;;  %v673_v58 = vadd.f32 %v656_v54, %v609_v49  ;;  %v604_v52 = vadd.f32 %v588_v31, %v522_v1  ;;  %v605_v37 = vadd.f32 %v589_v32, %v523_v29 }
  0xad   : > { %1444 = vperm.xlu1 %3719, %v1418_v50   ;;  %v687_v60 = vmax.f32 %v671_v53, 0.0  ;;  %v686_v61 = vmax.f32 %v670_v51, 0.0  ;;  %v500_v48 = vmul.f32 %v4127_v16, %v4110_v59  ;;  %v501_v49 = vmul.f32 %v4129_v17, %v4110_v59 }
  0xae   : > { %v384_v62 = vpop.permute.xlu1 %383  ;;  %v689_v63 = vmax.f32 %v673_v58, 0.0  ;;  %v688_v0 = vmax.f32 %v672_v57, 0.0 }
  0xaf   : > { %v434_v50 = vmul.f32 %v4131_v18, %v384_v62  ;;  %v435_v51 = vmul.f32 %v4133_v19, %v384_v62  ;;  %v374_v53 = vpop.permute.xlu0 %373 }
  0xb0   : > { %v705_v2 = vpack.c.bf16 %v689_v63, %v687_v60  ;;  %v704_v3 = vpack.c.bf16 %v688_v0, %v686_v61  ;;  %v430_v24 = vmul.f32 %v4131_v18, %v374_v53  ;;  %v431_v25 = vmul.f32 %v4133_v19, %v374_v53  ;;  %v3740_v53 = vld [vmem:[%s5190_s2] sm:$0xff]  }
  0xb1   : > { %1434 = vperm.xlu1 %3719, %v1416_v56   ;;  %v516_v56 = vadd.f32 %v500_v48, %v434_v50  ;;  %v517_v63 = vadd.f32 %v501_v49, %v435_v51 }
  0xb2   : > { %v389_v4 = vpop.permute.xlu1 %388  ;;  %795 = vmatprep.subr.bf16.mxu0 %v705_v2  ;;  %3670 = vmatprep.subr.bf16.mxu1 %v705_v2 }
  0xb3   : > { %796 = vmatpush1.bf16.msra.mxu0 %v704_v3  ;;  %3674 = vmatpush1.bf16.msra.mxu1 %v704_v3  ;;  %v436_v0 = vmul.f32 %v4131_v18, %v389_v4  ;;  %v437_v59 = vmul.f32 %v4133_v19, %v389_v4  ;;  %v584_v3 = vmul.f32 %v4144_v27, %v4101_v55  ;;  %v631_v15 = vpop.permute.xlu0 %630 }
  0xb5   : > { %1424 = vperm.xlu1 %3719, %v1414_v7   ;;  %v585_v7 = vmul.f32 %v4146_v28, %v4101_v55 }
  0xb7   : > { %v460_v8 = vpop.permute.xlu1 %459 }
  0xb8   : > { %v502_v58 = vmul.f32 %v4127_v16, %v460_v8  ;;  %v503_v60 = vmul.f32 %v4129_v17, %v460_v8  ;;  %v498_v8 = vmul.f32 %v4127_v16, %v4117_v6 }
  0xba   : > { %v518_v13 = vadd.f32 %v502_v58, %v436_v0  ;;  %v519_v4 = vadd.f32 %v503_v60, %v437_v59  ;;  %v3743_v58 = vld [vmem:[%s5190_s2 + $0x18] sm:$0xff]  }
  0xbc   : > { %v538_v20 = vpop.permute.xlu1 %537  ;;  %v600_v32 = vadd.f32 %v584_v3, %v518_v13 }
  0xbd   : > { %v582_v54 = vmul.f32 %v4144_v27, %v538_v20  ;;  %v583_v57 = vmul.f32 %v4146_v28, %v538_v20 }
  0xbf   : > { %v598_v9 = vadd.f32 %v582_v54, %v516_v56  ;;  %v599_v10 = vadd.f32 %v583_v57, %v517_v63  ;;  %v3741_v54 = vld [vmem:[%s5190_s2 + $0x10] sm:$0xff]   ;;  %v3742_v57 = vld [vmem:[%s5190_s2 + $0x8] sm:$0xff]  }
  0xc1   : > { %v641_v30 = vpop.permute.xlu1 %640  ;;  %v663_v29 = vadd.f32 %v631_v15, %v599_v10 }
  0xc2   : > { %v666_v35 = vadd.f32 %v641_v30, %v602_v33  ;;  %v667_v36 = vadd.f32 %v641_v30, %v603_v34  ;;  %v662_v30 = vadd.f32 %v631_v15, %v598_v9 }
  0xc4   : > { %v682_v42 = vmax.f32 %v666_v35, 0.0  ;;  %v683_v43 = vmax.f32 %v667_v36, 0.0 }
  0xc5   : > { %v646_v39 = vpop.permute.xlu1 %645 }
  0xc6   : > { %v668_v40 = vadd.f32 %v646_v39, %v604_v52  ;;  %v669_v41 = vadd.f32 %v646_v39, %v605_v37  ;;  %v679_v39 = vmax.f32 %v663_v29, 0.0 }
  0xc8   : > { %v684_v44 = vmax.f32 %v668_v40, 0.0  ;;  %v685_v21 = vmax.f32 %v669_v41, 0.0  ;;  %v678_v40 = vmax.f32 %v662_v30, 0.0 }
  0xc9   : > { %v379_v45 = vpop.permute.xlu1 %378 }
  0xca   : > { %v703_v46 = vpack.c.bf16 %v685_v21, %v683_v43  ;;  %v702_v47 = vpack.c.bf16 %v684_v44, %v682_v42  ;;  %v432_v2 = vmul.f32 %v4131_v18, %v379_v45  ;;  %v433_v62 = vmul.f32 %v4133_v19, %v379_v45  ;;  %v626_v18 = vpop.permute.xlu0 %625 }
  0xcc   : > { %797 = vmatprep.subr.bf16.mxu0 %v703_v46  ;;  %3671 = vmatprep.subr.bf16.mxu1 %v703_v46  ;;  %v514_v12 = vadd.f32 %v498_v8, %v432_v2  ;;  %v515_v26 = vadd.f32 %v499_v11, %v433_v62 }
  0xcd   : > { %798 = vmatpush1.bf16.msra.mxu0 %v702_v47  ;;  %3675 = vmatpush1.bf16.msra.mxu1 %v702_v47 }
  0xce   : > { %v448_v38 = vpop.permute.xlu1 %447  ;;  %v752_v56 = vpop.permute.xlu0 %751 }
  0xcf   : > { %v496_v20 = vmul.f32 %v4127_v16, %v448_v38  ;;  %v497_v22 = vmul.f32 %v4129_v17, %v448_v38  ;;  %v601_v17 = vadd.f32 %v585_v7, %v519_v4 }
  0xd1   : > { %v512_v33 = vadd.f32 %v496_v20, %v430_v24  ;;  %v513_v34 = vadd.f32 %v497_v22, %v431_v25 }
  0xd2   : > { %v742_v9 = vpop.permute.xlu0 %741 }
  0xd3   : > { %v530_v61 = vpop.permute.xlu1 %529 }
  0xd4   : > { %v578_v6 = vmul.f32 %v4144_v27, %v530_v61  ;;  %v579_v1 = vmul.f32 %v4146_v28, %v530_v61 }
  0xd6   : > { %v594_v37 = vadd.f32 %v578_v6, %v512_v33  ;;  %v595_v19 = vadd.f32 %v579_v1, %v513_v34  ;;  %v732_v20 = vpop.permute.xlu0 %731 }
  0xd7   : > { %v534_v14 = vpop.permute.xlu1 %533 }
  0xd8   : > { %v580_v23 = vmul.f32 %v4144_v27, %v534_v14  ;;  %v581_v55 = vmul.f32 %v4146_v28, %v534_v14 }
  0xda   : > { %v596_v31 = vadd.f32 %v580_v23, %v514_v12  ;;  %v597_v16 = vadd.f32 %v581_v55, %v515_v26 }
  0xdc   : > { %v636_v35 = vpop.permute.xlu1 %635  ;;  %v661_v42 = vadd.f32 %v626_v18, %v597_v16  ;;  %v660_v28 = vadd.f32 %v626_v18, %v596_v31  ;;  %v722_v18 = vpop.permute.xlu0 %721 }
  0xdd   : > { %v664_v36 = vadd.f32 %v636_v35, %v600_v32  ;;  %v665_v52 = vadd.f32 %v636_v35, %v601_v17 }
  0xde   : > { %v677_v48 = vmax.f32 %v661_v42, 0.0  ;;  %v676_v49 = vmax.f32 %v660_v28, 0.0 }
  0xdf   : > { %v680_v41 = vmax.f32 %v664_v36, 0.0  ;;  %v681_v27 = vmax.f32 %v665_v52, 0.0 }
  0xe0   : > { %v621_v43 = vpop.permute.xlu1 %620 }
  0xe1   : > { %v658_v44 = vadd.f32 %v621_v43, %v594_v37  ;;  %v659_v21 = vadd.f32 %v621_v43, %v595_v19  ;;  %v701_v45 = vpack.c.bf16 %v681_v27, %v679_v39  ;;  %v700_v46 = vpack.c.bf16 %v680_v41, %v678_v40 }
  0xe3   : > { %v674_v47 = vmax.f32 %v658_v44, 0.0  ;;  %v675_v38 = vmax.f32 %v659_v21, 0.0  ;;  %799 = vmatprep.subr.bf16.mxu0 %v701_v45  ;;  %3672 = vmatprep.subr.bf16.mxu1 %v701_v45 }
  0xe4   : > { %800 = vmatpush1.bf16.msra.mxu0 %v700_v46  ;;  %3676 = vmatpush1.bf16.msra.mxu1 %v700_v46  ;;  %v747_v59 = vpop.permute.xlu1 %746 }
  0xe5   : > { %v699_v50 = vpack.c.bf16 %v677_v48, %v675_v38  ;;  %v698_v51 = vpack.c.bf16 %v676_v49, %v674_v47 }
  0xe7   : > { %801 = vmatprep.subr.bf16.mxu0 %v699_v50  ;;  %3673 = vmatprep.subr.bf16.mxu1 %v699_v50 }
  0xe8   : > { %802 = vmatpush1.bf16.msra.mxu0 %v698_v51  ;;  %3677 = vmatpush1.bf16.msra.mxu1 %v698_v51  ;;  %v737_v11 = vpop.permute.xlu1 %736 }
  0xeb   : > { %3302 = vmatmul.mubr.msk.bf16.vlgmr.msra.gmra.mxu0 %vm774_vm0, %v3740_v53  ;;  %3304 = vmatmul.mubr.msk.bf16.vlgmr.msra.gmra.mxu1 %vm774_vm0, %v3741_v54 }
  0xec   : > { %829 = vmatprep.mubr.bf16.mxu0 %v3866_v5  ;;  %849 = vmatprep.mubr.bf16.mxu1 %v3866_v5  ;;  %v727_v1 = vpop.permute.xlu1 %726 }
  0xf0   : > { %v717_v42 = vpop.permute.xlu1 %716 }
  0xf3   : > { %3303 = vmatmul.mubr.msk.bf16.gmra.mxu0 %vm774_vm0, %v3742_v57  ;;  %3305 = vmatmul.mubr.msk.bf16.gmra.mxu1 %vm774_vm0, %v3743_v58 }
  0xf4   : > { %1004 = vmatprep.mubr.bf16.mxu1 %v3866_v5  ;;  %1277 = vmatprep.mubr.bf16.mxu0 %v3866_v5 }
 0x1ab   : > { %v821_v60 = vpop.f32.mrf.mxu0  ;;  %v841_v61 = vpop.f32.mrf.mxu1 }
 0x1ac   : > { %v842_v33 = vadd.f32 %v841_v61, %v737_v11  ;;  %v822_v49 = vadd.f32 %v821_v60, %v717_v42  ;;  %v3745_v60 = vld [vmem:[%s5191_s3 + $0x8] sm:$0xff]  }
 0x1ad   : > { %v823_v63 = vpop.f32.mrf.mxu0  ;;  %v843_v0 = vpop.f32.mrf.mxu1 }
 0x1ae   : > { %v844_v26 = vadd.f32 %v843_v0, %v737_v11  ;;  %v868_v28 = vmax.f32 %v842_v33, 0.0  ;;  %v824_v44 = vadd.f32 %v823_v63, %v717_v42  ;;  %v860_v58 = vmax.f32 %v822_v49, 0.0  ;;  %v3746_v63 = vld [vmem:[%s5191_s3 + $0x10] sm:$0xff]   ;;  %v3747_v0 = vld [vmem:[%s5191_s3 + $0x18] sm:$0xff]  }
 0x1af   : > { %v825_v2 = vpop.f32.mrf.mxu0  ;;  %v845_v62 = vpop.f32.mrf.mxu1 }
 0x1b0   : > { %v846_v29 = vadd.f32 %v845_v62, %v742_v9  ;;  %v869_v35 = vmax.f32 %v844_v26, 0.0  ;;  %v826_v45 = vadd.f32 %v825_v2, %v722_v18  ;;  %v861_v51 = vmax.f32 %v824_v44, 0.0 }
 0x1b1   : > { %v827_v3 = vpop.f32.mrf.mxu0  ;;  %v847_v7 = vpop.f32.mrf.mxu1 }
 0x1b2   : > { %v848_v22 = vadd.f32 %v847_v7, %v742_v9  ;;  %v870_v37 = vmax.f32 %v846_v29, 0.0  ;;  %v828_v40 = vadd.f32 %v827_v3, %v722_v18  ;;  %v862_v53 = vmax.f32 %v826_v45, 0.0 }
 0x1b3   : > { %v831_v10 = vpop.f32.mrf.mxu0  ;;  %v851_v8 = vpop.f32.mrf.mxu1 }
 0x1b4   : > { %v852_v24 = vadd.f32 %v851_v8, %v747_v59  ;;  %v871_v31 = vmax.f32 %v848_v22, 0.0  ;;  %v832_v43 = vadd.f32 %v831_v10, %v727_v1  ;;  %v888_v46 = vpack.c.bf16 %v870_v37, %v868_v28 }
 0x1b5   : > { %v833_v13 = vpop.f32.mrf.mxu0  ;;  %v853_v4 = vpop.f32.mrf.mxu1  ;;  %v863_v38 = vmax.f32 %v828_v40, 0.0  ;;  %v884_v61 = vpack.c.bf16 %v862_v53, %v860_v58 }
 0x1b6   : > { %v854_v23 = vadd.f32 %v853_v4, %v747_v59  ;;  %v872_v34 = vmax.f32 %v852_v24, 0.0  ;;  %v834_v36 = vadd.f32 %v833_v13, %v727_v1  ;;  %v889_v41 = vpack.c.bf16 %v871_v31, %v869_v35  ;;  %v938_v13 = vpop.permute.xlu0 %937 }
 0x1b7   : > { %v835_v14 = vpop.f32.mrf.mxu0  ;;  %v855_v15 = vpop.f32.mrf.mxu1  ;;  %v864_v50 = vmax.f32 %v832_v43, 0.0  ;;  %v885_v57 = vpack.c.bf16 %v863_v38, %v861_v51 }
 0x1b8   : > { %v856_v55 = vadd.f32 %v855_v15, %v752_v56  ;;  %v873_v16 = vmax.f32 %v854_v23, 0.0  ;;  %v836_v19 = vadd.f32 %v835_v14, %v732_v20  ;;  %v865_v21 = vmax.f32 %v834_v36, 0.0  ;;  %v933_v14 = vpop.permute.xlu1 %932 }
 0x1b9   : > { %v837_v25 = vpop.f32.mrf.mxu0  ;;  %v857_v12 = vpop.f32.mrf.mxu1 }
 0x1ba   : > { %v858_v6 = vadd.f32 %v857_v12, %v752_v56  ;;  %v874_v30 = vmax.f32 %v856_v55, 0.0  ;;  %v838_v32 = vadd.f32 %v837_v25, %v732_v20  ;;  %v866_v47 = vmax.f32 %v836_v19, 0.0  ;;  %v3744_v56 = vld [vmem:[%s5191_s3] sm:$0xff]   ;;  %v928_v22 = vpop.permute.xlu0 %927 }
 0x1bc   : > { %v875_v17 = vmax.f32 %v858_v6, 0.0  ;;  %v890_v39 = vpack.c.bf16 %v874_v30, %v872_v34  ;;  %v867_v27 = vmax.f32 %v838_v32, 0.0  ;;  %v886_v54 = vpack.c.bf16 %v866_v47, %v864_v50  ;;  %v923_v55 = vpop.permute.xlu1 %922 }
 0x1be   : > { %v891_v52 = vpack.c.bf16 %v875_v17, %v873_v16  ;;  %v887_v48 = vpack.c.bf16 %v867_v27, %v865_v21  ;;  %v918_v1 = vpop.permute.xlu0 %917 }
 0x1c0   : > { %980 = vmatprep.subr.bf16.mxu1 %v891_v52  ;;  %v913_v32 = vpop.permute.xlu1 %912 }
 0x1c1   : > { %981 = vmatpush1.bf16.msra.mxu1 %v890_v39 }
 0x1c2   : > { %982 = vmatprep.subr.bf16.mxu1 %v889_v41  ;;  %v908_v41 = vpop.permute.xlu0 %907 }
 0x1c4   : > { %v903_v45 = vpop.permute.xlu1 %902 }
 0x1c5   : > { %983 = vmatpush1.bf16.msra.mxu1 %v888_v46 }
 0x1c6   : > { %984 = vmatprep.subr.bf16.mxu1 %v887_v48 }
 0x1c9   : > { %985 = vmatpush1.bf16.msra.mxu1 %v886_v54 }
 0x1ca   : > { %986 = vmatprep.subr.bf16.mxu1 %v885_v57 }
 0x1cd   : > { %987 = vmatpush1.bf16.msra.mxu1 %v884_v61 }
 0x1d0   : > { %3310 = vmatmul.mubr.msk.bf16.vlgmr.msra.gmra.mxu1 %vm774_vm0, %v3744_v56 }
 0x1d1   : > { %1014 = vmatprep.mubr.bf16.mxu1 %v3866_v5 }
 0x1d8   : > { %3311 = vmatmul.mubr.msk.bf16.gmra.mxu1 %vm774_vm0, %v3745_v60 }
 0x1d9   : > { %1024 = vmatprep.mubr.bf16.mxu1 %v3866_v5 }
 0x1e0   : > { %3312 = vmatmul.mubr.msk.bf16.gmra.mxu1 %vm774_vm0, %v3746_v63 }
 0x1e1   : > { %1034 = vmatprep.mubr.bf16.mxu1 %v3866_v5 }
 0x1e8   : > { %3313 = vmatmul.mubr.msk.bf16.gmra.mxu1 %vm774_vm0, %v3747_v0 }
 0x1e9   : > { %1518 = vmatprep.mubr.bf16.mxu1 %v3866_v5 }
 0x290   : > { %v1006_v59 = vpop.f32.mrf.mxu1 }
 0x291   : > { %v1007_v57 = vadd.f32 %v1006_v59, %v903_v45  ;;  %v3749_v59 = vld [vmem:[%s5192_s4 + $0x8] sm:$0xff]  }
 0x292   : > { %v1008_v2 = vpop.f32.mrf.mxu1 }
 0x293   : > { %v1009_v38 = vadd.f32 %v1008_v2, %v903_v45  ;;  %v1045_v0 = vmax.f32 %v1007_v57, 0.0  ;;  %v3748_v2 = vld [vmem:[%s5192_s4] sm:$0xff]  }
 0x294   : > { %v1010_v62 = vpop.f32.mrf.mxu1 }
 0x295   : > { %v1011_v49 = vadd.f32 %v1010_v62, %v908_v41  ;;  %v1046_v61 = vmax.f32 %v1009_v38, 0.0  ;;  %v3750_v62 = vld [vmem:[%s5192_s4 + $0x10] sm:$0xff]  }
 0x296   : > { %v1012_v3 = vpop.f32.mrf.mxu1 }
 0x297   : > { %v1013_v43 = vadd.f32 %v1012_v3, %v908_v41  ;;  %v1047_v56 = vmax.f32 %v1011_v49, 0.0 }
 0x298   : > { %v1016_v7 = vpop.f32.mrf.mxu1 }
 0x299   : > { %v1017_v46 = vadd.f32 %v1016_v7, %v913_v32  ;;  %v1048_v53 = vmax.f32 %v1013_v43, 0.0  ;;  %v1077_v3 = vpack.c.bf16 %v1047_v56, %v1045_v0  ;;  %v3751_v7 = vld [vmem:[%s5192_s4 + $0x18] sm:$0xff]  }
 0x29a   : > { %v1018_v9 = vpop.f32.mrf.mxu1 }
 0x29b   : > { %v1019_v19 = vadd.f32 %v1018_v9, %v913_v32  ;;  %v1049_v58 = vmax.f32 %v1017_v46, 0.0  ;;  %v1078_v63 = vpack.c.bf16 %v1048_v53, %v1046_v61  ;;  %v3752_v9 = vld [vmem:[%s5192_s4 + $0x20] sm:$0xff]  }
 0x29c   : > { %v1020_v10 = vpop.f32.mrf.mxu1 }
 0x29d   : > { %v1021_v27 = vadd.f32 %v1020_v10, %v918_v1  ;;  %v1050_v48 = vmax.f32 %v1019_v19, 0.0  ;;  %v3753_v10 = vld [vmem:[%s5192_s4 + $0x28] sm:$0xff]  }
 0x29e   : > { %v1022_v8 = vpop.f32.mrf.mxu1 }
 0x29f   : > { %v1023_v34 = vadd.f32 %v1022_v8, %v918_v1  ;;  %v1051_v50 = vmax.f32 %v1021_v27, 0.0  ;;  %v3754_v8 = vld [vmem:[%s5192_s4 + $0x30] sm:$0xff]  }
 0x2a0   : > { %v1026_v11 = vpop.f32.mrf.mxu1 }
 0x2a1   : > { %v1027_v18 = vadd.f32 %v1026_v11, %v923_v55  ;;  %v1052_v44 = vmax.f32 %v1023_v34, 0.0  ;;  %v1079_v60 = vpack.c.bf16 %v1051_v50, %v1049_v58  ;;  %v3755_v11 = vld [vmem:[%s5192_s4 + $0x38] sm:$0xff]  }
 0x2a2   : > { %v1028_v4 = vpop.f32.mrf.mxu1 }
 0x2a3   : > { %v1029_v31 = vadd.f32 %v1028_v4, %v923_v55  ;;  %v1053_v47 = vmax.f32 %v1027_v18, 0.0  ;;  %v1080_v54 = vpack.c.bf16 %v1052_v44, %v1050_v48  ;;  %v4299_v4 = vpop.permute.xlu0 %1178 }
 0x2a4   : > { %v1030_v15 = vpop.f32.mrf.mxu1 }
 0x2a5   : > { %v1031_v17 = vadd.f32 %v1030_v15, %v928_v22  ;;  %v1054_v39 = vmax.f32 %v1029_v31, 0.0 }
 0x2a6   : > { %v1032_v20 = vpop.f32.mrf.mxu1 }
 0x2a7   : > { %v1033_v12 = vadd.f32 %v1032_v20, %v928_v22  ;;  %v1055_v42 = vmax.f32 %v1031_v17, 0.0  ;;  %v4303_v15 = vpop.permute.xlu0 %1168 }
 0x2a8   : > { %v1036_v23 = vpop.f32.mrf.mxu1 }
 0x2a9   : > { %v1037_v29 = vadd.f32 %v1036_v23, %v933_v14  ;;  %v1056_v35 = vmax.f32 %v1033_v12, 0.0  ;;  %v1081_v51 = vpack.c.bf16 %v1055_v42, %v1053_v47 }
 0x2aa   : > { %v1038_v24 = vpop.f32.mrf.mxu1 }
 0x2ab   : > { %v1039_v26 = vadd.f32 %v1038_v24, %v933_v14  ;;  %v1057_v37 = vmax.f32 %v1037_v29, 0.0  ;;  %v1082_v21 = vpack.c.bf16 %v1056_v35, %v1054_v39  ;;  %v4307_v22 = vpop.permute.xlu0 %1158 }
 0x2ac   : > { %v1040_v25 = vpop.f32.mrf.mxu1 }
 0x2ad   : > { %v1041_v6 = vadd.f32 %v1040_v25, %v938_v13  ;;  %v1058_v36 = vmax.f32 %v1039_v26, 0.0 }
 0x2ae   : > { %v1042_v30 = vpop.f32.mrf.mxu1 }
 0x2af   : > { %v1043_v16 = vadd.f32 %v1042_v30, %v938_v13  ;;  %v1059_v33 = vmax.f32 %v1041_v6, 0.0  ;;  %v4297_v13 = vpop.permute.xlu1 %1173  ;;  %v4311_v55 = vpop.permute.xlu0 %1148 }
 0x2b1   : > { %v1060_v52 = vmax.f32 %v1043_v16, 0.0  ;;  %v1083_v28 = vpack.c.bf16 %v1059_v33, %v1057_v37 }
 0x2b3   : > { %v1084_v40 = vpack.c.bf16 %v1060_v52, %v1058_v36  ;;  %v4301_v14 = vpop.permute.xlu1 %1163  ;;  %v4315_v25 = vpop.permute.xlu0 %1138 }
 0x2b5   : > { %1253 = vmatprep.subr.bf16.mxu0 %v1084_v40 }
 0x2b6   : > { %1254 = vmatpush1.bf16.msra.mxu0 %v1083_v28 }
 0x2b7   : > { %1255 = vmatprep.subr.bf16.mxu0 %v1082_v21  ;;  %v4305_v20 = vpop.permute.xlu1 %1153  ;;  %v4319_v26 = vpop.permute.xlu0 %1128 }
 0x2ba   : > { %1256 = vmatpush1.bf16.msra.mxu0 %v1081_v51 }
 0x2bb   : > { %1257 = vmatprep.subr.bf16.mxu0 %v1080_v54  ;;  %v4309_v23 = vpop.permute.xlu1 %1143  ;;  %v1119_v1 = vpop.permute.xlu0 %1118 }
 0x2be   : > { %1258 = vmatpush1.bf16.msra.mxu0 %v1079_v60 }
 0x2bf   : > { %1259 = vmatprep.subr.bf16.mxu0 %v1078_v63  ;;  %v4313_v24 = vpop.permute.xlu1 %1133  ;;  %v1109_v32 = vpop.permute.xlu0 %1108 }
 0x2c2   : > { %1260 = vmatpush1.bf16.msra.mxu0 %v1077_v3 }
 0x2c3   : > { %v4317_v12 = vpop.permute.xlu1 %1123 }
 0x2c5   : > { %3322 = vmatmul.mubr.msk.bf16.vlgmr.msra.gmra.mxu0 %vm774_vm0, %v3748_v2 }
 0x2c6   : > { %1287 = vmatprep.mubr.bf16.mxu0 %v3866_v5 }
 0x2c7   : > { %v1114_v6 = vpop.permute.xlu1 %1113 }
 0x2cb   : > { %v1104_v30 = vpop.permute.xlu1 %1103 }
 0x2cd   : > { %3323 = vmatmul.mubr.msk.bf16.gmra.mxu0 %vm774_vm0, %v3749_v59 }
 0x2ce   : > { %1297 = vmatprep.mubr.bf16.mxu0 %v3866_v5 }
 0x2d5   : > { %3324 = vmatmul.mubr.msk.bf16.gmra.mxu0 %vm774_vm0, %v3750_v62 }
 0x2d6   : > { %1307 = vmatprep.mubr.bf16.mxu0 %v3866_v5 }
 0x2dd   : > { %3325 = vmatmul.mubr.msk.bf16.gmra.mxu0 %vm774_vm0, %v3751_v7 }
 0x2de   : > { %1317 = vmatprep.mubr.bf16.mxu0 %v3866_v5 }
 0x2e5   : > { %3326 = vmatmul.mubr.msk.bf16.gmra.mxu0 %vm774_vm0, %v3752_v9 }
 0x2e6   : > { %1327 = vmatprep.mubr.bf16.mxu0 %v3866_v5 }
 0x2ed   : > { %3327 = vmatmul.mubr.msk.bf16.gmra.mxu0 %vm774_vm0, %v3753_v10 }
 0x2ee   : > { %1337 = vmatprep.mubr.bf16.mxu0 %v3866_v5 }
 0x2f5   : > { %3328 = vmatmul.mubr.msk.bf16.gmra.mxu0 %vm774_vm0, %v3754_v8 }
 0x2f6   : > { %1347 = vmatprep.mubr.bf16.mxu0 %v3866_v5 }
 0x2fd   : > { %3329 = vmatmul.mubr.msk.bf16.gmra.mxu0 %vm774_vm0, %v3755_v11 }
 0x385   : > { %v1279_v29 = vpop.f32.mrf.mxu0 }
 0x386   : > { %v1280_v16 = vadd.f32 %v1279_v29, %v1104_v30 }
 0x387   : > { %v1281_v31 = vpop.f32.mrf.mxu0 }
 0x388   : > { %v1282_v33 = vadd.f32 %v1281_v31, %v1104_v30  ;;  %v1358_v36 = vmax.f32 %v1280_v16, 0.0 }
 0x389   : > { %v1283_v17 = vpop.f32.mrf.mxu0 }
 0x38a   : > { %v1284_v34 = vadd.f32 %v1283_v17, %v1109_v32  ;;  %v1359_v19 = vmax.f32 %v1282_v33, 0.0 }
 0x38b   : > { %v1285_v35 = vpop.f32.mrf.mxu0 }
 0x38c   : > { %v1360_v52 = vmax.f32 %v1284_v34, 0.0  ;;  %v1286_v18 = vadd.f32 %v1285_v35, %v1109_v32 }
 0x38d   : > { %v1289_v37 = vpop.f32.mrf.mxu0 }
 0x38e   : > { %v4321_v39 = vpack.c.bf16 %v1360_v52, %v1358_v36  ;;  %v1361_v40 = vmax.f32 %v1286_v18, 0.0  ;;  %v1290_v42 = vadd.f32 %v1289_v37, %v1114_v6 }
 0x38f   : > { %v1291_v41 = vpop.f32.mrf.mxu0 }
 0x390   : > { %v4323_v27 = vpack.c.bf16 %v1361_v40, %v1359_v19  ;;  %v1292_v43 = vadd.f32 %v1291_v41, %v1114_v6  ;;  %v1362_v45 = vmax.f32 %v1290_v42, 0.0 }
 0x391   : > { %v1293_v28 = vpop.f32.mrf.mxu0 }
 0x392   : > { %v1294_v44 = vadd.f32 %v1293_v28, %v1119_v1  ;;  %v1363_v48 = vmax.f32 %v1292_v43, 0.0 }
 0x393   : > { %v1295_v21 = vpop.f32.mrf.mxu0 }
 0x394   : > { %v1364_v46 = vmax.f32 %v1294_v44, 0.0  ;;  %v1296_v47 = vadd.f32 %v1295_v21, %v1119_v1 }
 0x395   : > { %v4325_v38 = vpop.f32.mrf.mxu0 }
 0x396   : > { %v4327_v49 = vpack.c.bf16 %v1364_v46, %v1362_v45  ;;  %v1365_v50 = vmax.f32 %v1296_v47, 0.0 }
 0x397   : > { %v4329_v51 = vpop.f32.mrf.mxu0 }
 0x398   : > { %v4331_v53 = vpack.c.bf16 %v1365_v50, %v1363_v48 }
 0x399   : > { %v4333_v54 = vpop.f32.mrf.mxu0 }
 0x39b   : > { %v4335_v57 = vpop.f32.mrf.mxu0 }
 0x39d   : > { %v4337_v58 = vpop.f32.mrf.mxu0 }
 0x39f   : > { %v1311_v61 = vpop.f32.mrf.mxu0 }
 0x3a1   : > { %v1313_v56 = vpop.f32.mrf.mxu0 }
 0x3a3   : > { %v1315_v60 = vpop.f32.mrf.mxu0 }
 0x3a5   : > { %v1319_v63 = vpop.f32.mrf.mxu0 }
 0x3a7   : > { %v1321_v0 = vpop.f32.mrf.mxu0 }
 0x3a9   : > { %v1323_v3 = vpop.f32.mrf.mxu0 }
 0x3ab   : > { %v1325_v2 = vpop.f32.mrf.mxu0 }
 0x3ad   : > { %v1329_v59 = vpop.f32.mrf.mxu0 }
 0x3ae   : > { %v1330_v47 = vadd.f32 %v1329_v59, %v4305_v20 }
 0x3af   : > { %v1331_v62 = vpop.f32.mrf.mxu0 }
 0x3b0   : > { %v1332_v28 = vadd.f32 %v1331_v62, %v4305_v20  ;;  %v1324_v62 = vadd.f32 %v1323_v3, %v4311_v55  ;;  %v1312_v20 = vadd.f32 %v1311_v61, %v4313_v24 }
 0x3b1   : > { %v1333_v7 = vpop.f32.mrf.mxu0 }
 0x3b2   : > { %v1334_v44 = vadd.f32 %v1333_v7, %v4307_v22  ;;  %v1379_v50 = vmax.f32 %v1332_v28, 0.0  ;;  %v1371_v61 = vmax.f32 %v1312_v20, 0.0 }
 0x3b3   : > { %v1335_v9 = vpop.f32.mrf.mxu0 }
 0x3b4   : > { %v1336_v18 = vadd.f32 %v1335_v9, %v4307_v22  ;;  %v1380_v9 = vmax.f32 %v1334_v44, 0.0  ;;  %v1316_v22 = vadd.f32 %v1315_v60, %v4315_v25  ;;  %v1310_v60 = vadd.f32 %v4337_v58, %v4313_v24 }
 0x3b5   : > { %v1339_v10 = vpop.f32.mrf.mxu0 }
 0x3b6   : > { %v1340_v41 = vadd.f32 %v1339_v10, %v4301_v14  ;;  %v1373_v3 = vmax.f32 %v1316_v22, 0.0 }
 0x3b7   : > { %v1341_v8 = vpop.f32.mrf.mxu0 }
 0x3b8   : > { %v1342_v34 = vadd.f32 %v1341_v8, %v4301_v14  ;;  %v1382_v48 = vmax.f32 %v1340_v41, 0.0  ;;  %v1322_v14 = vadd.f32 %v1321_v0, %v4309_v23  ;;  %v1314_v0 = vadd.f32 %v1313_v56, %v4315_v25  ;;  %v1455_v41 = vpop.permute.xlu1 %1454 }
 0x3b9   : > { %v1343_v11 = vpop.f32.mrf.mxu0  ;;  %v1304_v25 = vadd.f32 %v4333_v54, %v4319_v26 }
 0x3ba   : > { %v1344_v36 = vadd.f32 %v1343_v11, %v4303_v15  ;;  %v1383_v43 = vmax.f32 %v1342_v34, 0.0  ;;  %v1378_v11 = vmax.f32 %v1330_v47, 0.0  ;;  %v1375_v59 = vmax.f32 %v1322_v14, 0.0 }
 0x3bb   : > { %v1345_v6 = vpop.f32.mrf.mxu0  ;;  %v1372_v56 = vmax.f32 %v1314_v0, 0.0  ;;  %v1368_v58 = vmax.f32 %v1304_v25, 0.0 }
 0x3bc   : > { %v1346_v31 = vadd.f32 %v1345_v6, %v4303_v15  ;;  %v1384_v21 = vmax.f32 %v1344_v36, 0.0  ;;  %v1381_v15 = vmax.f32 %v1336_v18, 0.0  ;;  %v1376_v6 = vmax.f32 %v1324_v62, 0.0 }
 0x3bd   : > { %v1349_v1 = vpop.f32.mrf.mxu0 }
 0x3be   : > { %v1350_v17 = vadd.f32 %v1349_v1, %v4297_v13  ;;  %v1385_v37 = vmax.f32 %v1346_v31, 0.0  ;;  %v1410_v10 = vpack.c.bf16 %v1384_v21, %v1382_v48  ;;  %v1409_v8 = vpack.c.bf16 %v1381_v15, %v1379_v50 }
 0x3bf   : > { %v1351_v29 = vpop.f32.mrf.mxu0  ;;  %v1408_v1 = vpack.c.bf16 %v1380_v9, %v1378_v11 }
 0x3c0   : > { %v1352_v16 = vadd.f32 %v1351_v29, %v4297_v13  ;;  %v1386_v42 = vmax.f32 %v1350_v17, 0.0  ;;  %v1411_v46 = vpack.c.bf16 %v1385_v37, %v1383_v43  ;;  %v1460_v37 = vpop.permute.xlu0 %1459 }
 0x3c1   : > { %v1353_v30 = vpop.f32.mrf.mxu0 }
 0x3c2   : > { %v1354_v32 = vadd.f32 %v1353_v30, %v4299_v4  ;;  %v1387_v19 = vmax.f32 %v1352_v16, 0.0  ;;  %v1405_v16 = vpack.c.bf16 %v1373_v3, %v1371_v61 }
 0x3c3   : > { %v1355_v33 = vpop.f32.mrf.mxu0 }
 0x3c4   : > { %v1356_v35 = vadd.f32 %v1355_v33, %v4299_v4  ;;  %v1388_v52 = vmax.f32 %v1354_v32, 0.0  ;;  %v1326_v4 = vadd.f32 %v1325_v2, %v4311_v55  ;;  %v1320_v2 = vadd.f32 %v1319_v63, %v4309_v23  ;;  %v1450_v28 = vpop.permute.xlu0 %1449 }
 0x3c5   : > { %v1306_v55 = vadd.f32 %v4335_v57, %v4319_v26  ;;  %v1302_v23 = vadd.f32 %v4329_v51, %v4317_v12  ;;  %v1300_v57 = vadd.f32 %v4325_v38, %v4317_v12  ;;  %v1370_v32 = vmax.f32 %v1310_v60, 0.0  ;;  %v3756_v12 = vld [vmem:[%s5193_s5] sm:$0xff]   ;;  %v3757_v26 = vld [vmem:[%s5193_s5 + $0x8] sm:$0xff]  }
 0x3c6   : > { %v1389_v40 = vmax.f32 %v1356_v35, 0.0  ;;  %v1412_v45 = vpack.c.bf16 %v1388_v52, %v1386_v42  ;;  %v1377_v7 = vmax.f32 %v1326_v4, 0.0  ;;  %v1374_v30 = vmax.f32 %v1320_v2, 0.0 }
 0x3c7   : > { %v1369_v31 = vmax.f32 %v1306_v55, 0.0  ;;  %v1367_v24 = vmax.f32 %v1302_v23, 0.0  ;;  %v1404_v17 = vpack.c.bf16 %v1372_v56, %v1370_v32  ;;  %v1366_v51 = vmax.f32 %v1300_v57, 0.0 }
 0x3c8   : > { %v1413_v13 = vpack.c.bf16 %v1389_v40, %v1387_v19  ;;  %v1407_v29 = vpack.c.bf16 %v1377_v7, %v1375_v59  ;;  %v1406_v63 = vpack.c.bf16 %v1376_v6, %v1374_v30 }
 0x3c9   : > { %v1403_v33 = vpack.c.bf16 %v1369_v31, %v1367_v24  ;;  %v1402_v34 = vpack.c.bf16 %v1368_v58, %v1366_v51 }
 0x3ca   : > { %1486 = vmatprep.subr.bf16.mxu1 %v1413_v13  ;;  %v1445_v13 = vpop.permute.xlu1 %1444 }
 0x3cb   : > { %1487 = vmatpush1.bf16.msra.mxu1 %v1412_v45  ;;  %v1440_v45 = vpop.permute.xlu0 %1439 }
 0x3cc   : > { %1488 = vmatprep.subr.bf16.mxu1 %v1411_v46 }
 0x3cf   : > { %1489 = vmatpush1.bf16.msra.mxu1 %v1410_v10  ;;  %v1435_v10 = vpop.permute.xlu1 %1434  ;;  %v1430_v20 = vpop.permute.xlu0 %1429 }
 0x3d0   : > { %1490 = vmatprep.subr.bf16.mxu1 %v1409_v8 }
 0x3d3   : > { %1491 = vmatpush1.bf16.msra.mxu1 %v1408_v1  ;;  %v1425_v61 = vpop.permute.xlu1 %1424 }
 0x3d4   : > { %1492 = vmatprep.subr.bf16.mxu1 %v1407_v29 }
 0x3d7   : > { %1493 = vmatpush1.bf16.msra.mxu1 %v1406_v63 }
 0x3d8   : > { %1494 = vmatprep.subr.bf16.mxu1 %v1405_v16 }
 0x3db   : > { %1495 = vmatpush1.bf16.msra.mxu1 %v1404_v17 }
 0x3dc   : > { %1496 = vmatprep.subr.bf16.mxu1 %v1403_v33 }
 0x3df   : > { %1497 = vmatpush1.bf16.msra.mxu1 %v1402_v34 }
 0x3e0   : > { %1498 = vmatprep.subr.bf16.mxu1 %v4331_v53 }
 0x3e3   : > { %1499 = vmatpush1.bf16.msra.mxu1 %v4327_v49 }
 0x3e4   : > { %1500 = vmatprep.subr.bf16.mxu1 %v4323_v27  ;;  %v3758_v27 = vld [vmem:[%s5193_s5 + $0x10] sm:$0xff]  }
 0x3e7   : > { %1501 = vmatpush1.bf16.msra.mxu1 %v4321_v39  ;;  %v3759_v39 = vld [vmem:[%s5193_s5 + $0x18] sm:$0xff]  }
 0x3ea   : > { %1519 = vmatmul.mubr.bf16.vlgmr.msra.gmra.mxu1 %v3756_v12 }
 0x3eb   : > { %1528 = vmatprep.mubr.bf16.mxu1 %v3866_v5 }
 0x3f2   : > { %1529 = vmatmul.mubr.bf16.gmra.mxu1 %v3757_v26 }
 0x3f3   : > { %1538 = vmatprep.mubr.bf16.mxu1 %v3866_v5 }
 0x3fa   : > { %1539 = vmatmul.mubr.bf16.gmra.mxu1 %v3758_v27 }
 0x3fb   : > { %1548 = vmatprep.mubr.bf16.mxu1 %v3866_v5 }
 0x402   : > { %1549 = vmatmul.mubr.bf16.gmra.mxu1 %v3759_v39 }
 0x4aa   : > { %v1520_v38 = vpop.f32.mrf.mxu1 }
 0x4ab   : > { %v1521_v17 = vadd.f32 %v1520_v38, %v1425_v61 }
 0x4ac   : > { %v1522_v49 = vpop.f32.mrf.mxu1 }
 0x4ad   : > { %v1523_v16 = vadd.f32 %v1522_v49, %v1425_v61  ;;  %v1559_v27 = vmax.f32 %v1521_v17, 0.0  ;;  %v1762_v61 = vld [vmem:[%s5196_s8 + $0x190] sm:$0xff]  ;;  %v1820_v17 = vld [vmem:[%s5196_s8 + $0x360] sm:$0xff] }
 0x4ae   : > { %v1524_v53 = vpop.f32.mrf.mxu1 }
 0x4af   : > { %v1525_v25 = vadd.f32 %v1524_v53, %v1430_v20  ;;  %v1560_v34 = vmax.f32 %v1523_v16, 0.0  ;;  %v1777_v16 = vld [vmem:[%s5196_s8 + $0x208] sm:$0xff] }
 0x4b0   : > { %v1526_v54 = vpop.f32.mrf.mxu1 }
 0x4b1   : > { %v1527_v55 = vadd.f32 %v1526_v54, %v1430_v20  ;;  %v1561_v33 = vmax.f32 %v1525_v25, 0.0  ;;  %v1575_v39 = vmax.f32 %v1559_v27, %v1560_v34  ;;  %v1785_v20 = vld [vmem:[%s5196_s8 + $0x248] sm:$0xff]  ;;  %v1779_v25 = vld [vmem:[%s5196_s8 + $0x218] sm:$0xff]  ;;  %v1802_v27 = vld [vmem:[%s5196_s8 + $0x2d0] sm:$0xff] }
 0x4b2   : > { %v1530_v35 = vpop.f32.mrf.mxu1  ;;  %v1821_v34 = vld [vmem:[%s5196_s8 + $0x368] sm:$0xff] }
 0x4b3   : > { %v1531_v56 = vadd.f32 %v1530_v35, %v1435_v10  ;;  %v1562_v57 = vmax.f32 %v1527_v55, 0.0  ;;  %v1780_v55 = vld [vmem:[%s5196_s8 + $0x220] sm:$0xff] }
 0x4b4   : > { %v1532_v36 = vpop.f32.mrf.mxu1 }
 0x4b5   : > { %v1533_v3 = vadd.f32 %v1532_v36, %v1435_v10  ;;  %v1563_v51 = vmax.f32 %v1531_v56, 0.0  ;;  %v1578_v26 = vmax.f32 %v1561_v33, %v1562_v57  ;;  %v1773_v10 = vld [vmem:[%s5196_s8 + $0x1e8] sm:$0xff]  ;;  %v1776_v56 = vld [vmem:[%s5196_s8 + $0x200] sm:$0xff]  ;;  %v1822_v57 = vld [vmem:[%s5196_s8 + $0x370] sm:$0xff] }
 0x4b6   : > { %v1534_v52 = vpop.f32.mrf.mxu1  ;;  %v1807_v33 = vld [vmem:[%s5196_s8 + $0x2f8] sm:$0xff] }
 0x4b7   : > { %v1535_v11 = vadd.f32 %v1534_v52, %v1440_v45  ;;  %v1564_v32 = vmax.f32 %v1533_v3, 0.0  ;;  %v1767_v3 = vld [vmem:[%s5196_s8 + $0x1b8] sm:$0xff] }
 0x4b8   : > { %v1536_v18 = vpop.f32.mrf.mxu1 }
 0x4b9   : > { %v1537_v62 = vadd.f32 %v1536_v18, %v1440_v45  ;;  %v1565_v63 = vmax.f32 %v1535_v11, 0.0  ;;  %v1581_v12 = vmax.f32 %v1563_v51, %v1564_v32  ;;  %v1768_v11 = vld [vmem:[%s5196_s8 + $0x1c0] sm:$0xff]  ;;  %v1761_v32 = vld [vmem:[%s5196_s8 + $0x188] sm:$0xff] }
 0x4ba   : > { %v1540_v19 = vpop.f32.mrf.mxu1  ;;  %v1804_v51 = vld [vmem:[%s5196_s8 + $0x2e0] sm:$0xff] }
 0x4bb   : > { %v1541_v59 = vadd.f32 %v1540_v19, %v1445_v13  ;;  %v1566_v29 = vmax.f32 %v1537_v62, 0.0  ;;  %v1789_v62 = vld [vmem:[%s5196_s8 + $0x268] sm:$0xff] }
 0x4bc   : > { %v1542_v40 = vpop.f32.mrf.mxu1 }
 0x4bd   : > { %v1543_v22 = vadd.f32 %v1542_v40, %v1445_v13  ;;  %v1567_v31 = vmax.f32 %v1541_v59, 0.0  ;;  %v1584_v58 = vmax.f32 %v1565_v63, %v1566_v29  ;;  %v1782_v59 = vld [vmem:[%s5196_s8 + $0x230] sm:$0xff]  ;;  %v1764_v29 = vld [vmem:[%s5196_s8 + $0x1a0] sm:$0xff]  ;;  %v1763_v63 = vld [vmem:[%s5196_s8 + $0x198] sm:$0xff] }
 0x4be   : > { %v1544_v42 = vpop.f32.mrf.mxu1 }
 0x4bf   : > { %v1545_v47 = vadd.f32 %v1544_v42, %v1450_v28  ;;  %v1568_v60 = vmax.f32 %v1543_v22, 0.0  ;;  %v1770_v22 = vld [vmem:[%s5196_s8 + $0x1d0] sm:$0xff] }
 0x4c0   : > { %v1546_v5 = vpop.f32.mrf.mxu1 }
 0x4c1   : > { %v1547_v4 = vadd.f32 %v1546_v5, %v1450_v28  ;;  %v1569_v0 = vmax.f32 %v1545_v47, 0.0  ;;  %v1587_v24 = vmax.f32 %v1567_v31, %v1568_v60  ;;  %v3760_v47 = vld [vmem:[%s5194_s6] sm:$0xff]   ;;  %v1781_v60 = vld [vmem:[%s5196_s8 + $0x228] sm:$0xff] }
 0x4c2   : > { %v1550_v43 = vpop.f32.mrf.mxu1  ;;  %3606 = vmatprep.mubr.msk.bf16.mxu1 %vm774_vm0, %v3760_v47  ;;  %v1760_v31 = vld [vmem:[%s5196_s8 + $0x180] sm:$0xff] }
 0x4c3   : > { %v1551_v44 = vadd.f32 %v1550_v43, %v1455_v41  ;;  %v1570_v7 = vmax.f32 %v1547_v4, 0.0  ;;  %v1808_v47 = vld [vmem:[%s5196_s8 + $0x300] sm:$0xff] }
 0x4c4   : > { %v1552_v21 = vpop.f32.mrf.mxu1 }
 0x4c5   : > { %v1553_v15 = vadd.f32 %v1552_v21, %v1455_v41  ;;  %v1571_v48 = vmax.f32 %v1551_v44, 0.0  ;;  %v1590_v23 = vmax.f32 %v1569_v0, %v1570_v7  ;;  %v1790_v44 = vld [vmem:[%s5196_s8 + $0x270] sm:$0xff]  ;;  %v1787_v7 = vld [vmem:[%s5196_s8 + $0x258] sm:$0xff]  ;;  %v1769_v0 = vld [vmem:[%s5196_s8 + $0x1c8] sm:$0xff] }
 0x4c6   : > { %v1554_v46 = vpop.f32.mrf.mxu1 }
 0x4c7   : > { %v1572_v14 = vmax.f32 %v1553_v15, 0.0  ;;  %v1555_v50 = vadd.f32 %v1554_v46, %v1460_v37  ;;  %v1774_v15 = vld [vmem:[%s5196_s8 + $0x1f0] sm:$0xff]  ;;  %v1791_v46 = vld [vmem:[%s5196_s8 + $0x278] sm:$0xff] }
 0x4c8   : > { %v1556_v9 = vpop.f32.mrf.mxu1 }
 0x4c9   : > { %v1557_v8 = vadd.f32 %v1556_v9, %v1460_v37  ;;  %v1593_v2 = vmax.f32 %v1571_v48, %v1572_v14  ;;  %v1573_v6 = vmax.f32 %v1555_v50, 0.0  ;;  %v1788_v48 = vld [vmem:[%s5196_s8 + $0x260] sm:$0xff]  ;;  %v1775_v14 = vld [vmem:[%s5196_s8 + $0x1f8] sm:$0xff]  ;;  %v1786_v9 = vld [vmem:[%s5196_s8 + $0x250] sm:$0xff] }
 0x4ca   : > { %v1772_v50 = vld [vmem:[%s5196_s8 + $0x1e0] sm:$0xff] }
 0x4cb   : > { %v1574_v1 = vmax.f32 %v1557_v8, 0.0  ;;  %1594 = vmax.xlane.f32.xlu1 %v1593_v2  ;;  %v1784_v8 = vld [vmem:[%s5196_s8 + $0x240] sm:$0xff]  ;;  %v1771_v2 = vld [vmem:[%s5196_s8 + $0x1d8] sm:$0xff] }
 0x4cd   : > { %v1596_v30 = vmax.f32 %v1573_v6, %v1574_v1  ;;  %v1766_v6 = vld [vmem:[%s5196_s8 + $0x1b0] sm:$0xff]  ;;  %v1783_v1 = vld [vmem:[%s5196_s8 + $0x238] sm:$0xff] }
 0x4cf   : > { %1597 = vmax.xlane.f32.xlu0 %v1596_v30  ;;  %1591 = vmax.xlane.f32.xlu1 %v1590_v23  ;;  %v1778_v30 = vld [vmem:[%s5196_s8 + $0x210] sm:$0xff]  ;;  %v1765_v23 = vld [vmem:[%s5196_s8 + $0x1a8] sm:$0xff] }
 0x4d3   : > { %1588 = vmax.xlane.f32.xlu0 %v1587_v24  ;;  %1585 = vmax.xlane.f32.xlu1 %v1584_v58  ;;  %v1806_v24 = vld [vmem:[%s5196_s8 + $0x2f0] sm:$0xff]  ;;  %v1823_v58 = vld [vmem:[%s5196_s8 + $0x378] sm:$0xff] }
 0x4d7   : > { %1582 = vmax.xlane.f32.xlu0 %v1581_v12  ;;  %1579 = vmax.xlane.f32.xlu1 %v1578_v26  ;;  %v1818_v12 = vld [vmem:[%s5196_s8 + $0x350] sm:$0xff]  ;;  %v1805_v26 = vld [vmem:[%s5196_s8 + $0x2e8] sm:$0xff] }
 0x4db   : > { %1576 = vmax.xlane.f32.xlu0 %v1575_v39  ;;  %v1819_v39 = vld [vmem:[%s5196_s8 + $0x358] sm:$0xff] }
 0x554   : > { %v1595_v53 = vpop.xlane.xlu1 %1594 }
 0x555   : > { %1610 = vst.msk [vmem:[#allocation2 + $0x30] sm:$0xff] %vm1603_vm1, %v1595_v53  ;;  %v1816_v53 = vld [vmem:[%s5196_s8 + $0x340] sm:$0xff] }
 0x558   : > { %v1598_v49 = vpop.xlane.xlu0 %1597  ;;  %v1592_v54 = vpop.xlane.xlu1 %1591 }
 0x559   : > { %1611 = vst.msk [vmem:[#allocation2 + $0x38] sm:$0xff] %vm1603_vm1, %v1598_v49  ;;  %1609 = vst.msk [vmem:[#allocation2 + $0x28] sm:$0xff] %vm1603_vm1, %v1592_v54  ;;  %v1803_v49 = vld [vmem:[%s5196_s8 + $0x2d8] sm:$0xff]  ;;  %v1800_v54 = vld [vmem:[%s5196_s8 + $0x2c0] sm:$0xff] }
 0x55c   : > { %v1589_v38 = vpop.xlane.xlu0 %1588  ;;  %v1586_v35 = vpop.xlane.xlu1 %1585  ;;  %v1650_v18 = vld [vmem:[#allocation2 + $0x30] sm:$0xff] }
 0x55d   : > { %1608 = vst.msk [vmem:[#allocation2 + $0x20] sm:$0xff] %vm1603_vm1, %v1589_v38  ;;  %1607 = vst.msk [vmem:[#allocation2 + $0x18] sm:$0xff] %vm1603_vm1, %v1586_v35  ;;  %v1817_v38 = vld [vmem:[%s5196_s8 + $0x348] sm:$0xff]  ;;  %v1814_v35 = vld [vmem:[%s5196_s8 + $0x330] sm:$0xff] }
 0x560   : > { %v1583_v36 = vpop.xlane.xlu0 %1582  ;;  %v1580_v52 = vpop.xlane.xlu1 %1579  ;;  %v1651_v37 = vld [vmem:[#allocation2 + $0x38] sm:$0xff]  ;;  %v1649_v42 = vld [vmem:[#allocation2 + $0x28] sm:$0xff] }
 0x561   : > { %1606 = vst.msk [vmem:[#allocation2 + $0x10] sm:$0xff] %vm1603_vm1, %v1583_v36  ;;  %1605 = vst.msk [vmem:[#allocation2 + $0x8] sm:$0xff] %vm1603_vm1, %v1580_v52  ;;  %v3720_v19 = vpack.i.bf16 %v1651_v37, %v1650_v18  ;;  %v1801_v36 = vld [vmem:[%s5196_s8 + $0x2c8] sm:$0xff]  ;;  %v1798_v52 = vld [vmem:[%s5196_s8 + $0x2b0] sm:$0xff] }
 0x562   : > { %v1815_v18 = vld [vmem:[%s5196_s8 + $0x338] sm:$0xff]  ;;  %v1812_v37 = vld [vmem:[%s5196_s8 + $0x320] sm:$0xff] }
 0x563   : > { %3721 = vperm.xlu0 %3717, %v3720_v19   ;;  %v1799_v19 = vld [vmem:[%s5196_s8 + $0x2b8] sm:$0xff] }
 0x564   : > { %v1577_v40 = vpop.xlane.xlu0 %1576  ;;  %v1648_v41 = vld [vmem:[#allocation2 + $0x20] sm:$0xff]  ;;  %v1647_v43 = vld [vmem:[#allocation2 + $0x18] sm:$0xff] }
 0x565   : > { %1604 = vst.msk [vmem:[#allocation2] sm:$0xff] %vm1603_vm1, %v1577_v40  ;;  %v3725_v28 = vpack.i.bf16 %v1649_v42, %v1648_v41  ;;  %v1796_v40 = vld [vmem:[%s5196_s8 + $0x2a0] sm:$0xff]  ;;  %v1813_v41 = vld [vmem:[%s5196_s8 + $0x328] sm:$0xff]  ;;  %v1810_v42 = vld [vmem:[%s5196_s8 + $0x310] sm:$0xff] }
 0x567   : > { %3726 = vperm.xlu1 %3719, %v3725_v28   ;;  %v1797_v28 = vld [vmem:[%s5196_s8 + $0x2a8] sm:$0xff] }
 0x568   : > { %v1646_v5 = vld [vmem:[#allocation2 + $0x10] sm:$0xff]  ;;  %v1645_v45 = vld [vmem:[#allocation2 + $0x8] sm:$0xff] }
 0x569   : > { %v3730_v13 = vpack.i.bf16 %v1647_v43, %v1646_v5 }
 0x56b   : > { %3731 = vperm.xlu1 %3719, %v3730_v13  }
 0x56c   : > { %v1644_v21 = vld [vmem:[#allocation2] sm:$0xff] }
 0x56d   : > { %v3735_v4 = vpack.i.bf16 %v1645_v45, %v1644_v21  ;;  %v1811_v21 = vld [vmem:[%s5196_s8 + $0x318] sm:$0xff] }
 0x56f   : > { %1976 = vperm.xlu1 %3719, %v1790_v44   ;;  %3736 = vperm.xlu0 %3717, %v3735_v4   ;;  %v1794_v44 = vld [vmem:[%s5196_s8 + $0x290] sm:$0xff] }
 0x573   : > { %1896 = vperm.xlu1 %3719, %v1774_v15   ;;  %1981 = vperm.xlu0 %3717, %v1791_v46  }
 0x577   : > { %1966 = vperm.xlu1 %3719, %v1788_v48   ;;  %1901 = vperm.xlu0 %3717, %v1775_v14   ;;  %v1795_v48 = vld [vmem:[%s5196_s8 + $0x298] sm:$0xff] }
 0x57b   : > { %1886 = vperm.xlu1 %3719, %v1772_v50   ;;  %1971 = vperm.xlu0 %3717, %v1789_v62  }
 0x57f   : > { %1956 = vperm.xlu1 %3719, %v1786_v9   ;;  %1891 = vperm.xlu0 %3717, %v1773_v10   ;;  %v1792_v10 = vld [vmem:[%s5196_s8 + $0x280] sm:$0xff] }
 0x583   : > { %1876 = vperm.xlu1 %3719, %v1770_v22   ;;  %1961 = vperm.xlu0 %3717, %v1787_v7   ;;  %v1809_v22 = vld [vmem:[%s5196_s8 + $0x308] sm:$0xff] }
 0x587   : > { %1946 = vperm.xlu1 %3719, %v1784_v8   ;;  %1881 = vperm.xlu0 %3717, %v1771_v2  }
 0x58b   : > { %1866 = vperm.xlu1 %3719, %v1768_v11   ;;  %1951 = vperm.xlu0 %3717, %v1785_v20   ;;  %v1793_v20 = vld [vmem:[%s5196_s8 + $0x288] sm:$0xff] }
 0x58f   : > { %1936 = vperm.xlu1 %3719, %v1782_v59   ;;  %1871 = vperm.xlu0 %3717, %v1769_v0   ;;  %v3761_v0 = vld [vmem:[%s5194_s6 + $0x8] sm:$0xff]  }
 0x593   : > { %1856 = vperm.xlu1 %3719, %v1766_v6   ;;  %1941 = vperm.xlu0 %3717, %v1783_v1   ;;  %v3762_v6 = vld [vmem:[%s5194_s6 + $0x10] sm:$0xff]   ;;  %v3763_v1 = vld [vmem:[%s5194_s6 + $0x18] sm:$0xff]  }
 0x597   : > { %1926 = vperm.xlu1 %3719, %v1780_v55   ;;  %1861 = vperm.xlu0 %3717, %v1767_v3   ;;  %v3764_v55 = vld [vmem:[%s5194_s6 + $0x20] sm:$0xff]   ;;  %v3765_v3 = vld [vmem:[%s5194_s6 + $0x28] sm:$0xff]  }
 0x59b   : > { %1846 = vperm.xlu1 %3719, %v1764_v29   ;;  %1931 = vperm.xlu0 %3717, %v1781_v60   ;;  %v3766_v29 = vld [vmem:[%s5194_s6 + $0x30] sm:$0xff]   ;;  %v3767_v60 = vld [vmem:[%s5194_s6 + $0x38] sm:$0xff]  }
 0x59f   : > { %1916 = vperm.xlu1 %3719, %v1778_v30   ;;  %1851 = vperm.xlu0 %3717, %v1765_v23   ;;  %v3768_v30 = vld [vmem:[%s5194_s6 + $0x40] sm:$0xff]   ;;  %v3769_v23 = vld [vmem:[%s5194_s6 + $0x48] sm:$0xff]  }
 0x5a3   : > { %1836 = vperm.xlu1 %3719, %v1762_v61   ;;  %1921 = vperm.xlu0 %3717, %v1779_v25   ;;  %v3770_v61 = vld [vmem:[%s5194_s6 + $0x50] sm:$0xff]   ;;  %v3771_v25 = vld [vmem:[%s5194_s6 + $0x58] sm:$0xff]  }
 0x5a7   : > { %1906 = vperm.xlu1 %3719, %v1776_v56   ;;  %1841 = vperm.xlu0 %3717, %v1763_v63   ;;  %v3772_v56 = vld [vmem:[%s5194_s6 + $0x60] sm:$0xff]   ;;  %v3773_v63 = vld [vmem:[%s5194_s6 + $0x68] sm:$0xff]  }
 0x5ab   : > { %1826 = vperm.xlu1 %3719, %v1760_v31   ;;  %1911 = vperm.xlu0 %3717, %v1777_v16   ;;  %v3774_v31 = vld [vmem:[%s5194_s6 + $0x70] sm:$0xff]   ;;  %v3775_v16 = vld [vmem:[%s5194_s6 + $0x78] sm:$0xff]  }
 0x5af   : > { %2136 = vperm.xlu1 %3719, %v1822_v57   ;;  %1831 = vperm.xlu0 %3717, %v1761_v32   ;;  %v3776_v57 = vld [vmem:[%s5194_s6 + $0x80] sm:$0xff]   ;;  %v3777_v32 = vld [vmem:[%s5194_s6 + $0x88] sm:$0xff]  }
 0x5b3   : > { %2056 = vperm.xlu1 %3719, %v1806_v24   ;;  %2141 = vperm.xlu0 %3717, %v1823_v58   ;;  %v3778_v24 = vld [vmem:[%s5194_s6 + $0x90] sm:$0xff]   ;;  %v3779_v58 = vld [vmem:[%s5194_s6 + $0x98] sm:$0xff]  }
 0x5b7   : > { %2126 = vperm.xlu1 %3719, %v1820_v17   ;;  %2061 = vperm.xlu0 %3717, %v1807_v33   ;;  %v3780_v17 = vld [vmem:[%s5194_s6 + $0xa0] sm:$0xff]  }
 0x5bb   : > { %2046 = vperm.xlu1 %3719, %v1804_v51   ;;  %2131 = vperm.xlu0 %3717, %v1821_v34   ;;  %v3781_v34 = vld [vmem:[%s5194_s6 + $0xa8] sm:$0xff]  }
 0x5bf   : > { %2116 = vperm.xlu1 %3719, %v1818_v12   ;;  %2051 = vperm.xlu0 %3717, %v1805_v26   ;;  %v3782_v12 = vld [vmem:[%s5194_s6 + $0xb0] sm:$0xff]  }
 0x5c3   : > { %2036 = vperm.xlu1 %3719, %v1802_v27   ;;  %2121 = vperm.xlu0 %3717, %v1819_v39   ;;  %v3783_v39 = vld [vmem:[%s5194_s6 + $0xb8] sm:$0xff]  }
 0x5c7   : > { %2106 = vperm.xlu1 %3719, %v1816_v53   ;;  %2041 = vperm.xlu0 %3717, %v1803_v49   ;;  %v3784_v53 = vld [vmem:[%s5194_s6 + $0xc0] sm:$0xff]  }
 0x5cb   : > { %2026 = vperm.xlu1 %3719, %v1800_v54   ;;  %2111 = vperm.xlu0 %3717, %v1817_v38  }
 0x5cf   : > { %2096 = vperm.xlu1 %3719, %v1814_v35   ;;  %2031 = vperm.xlu0 %3717, %v1801_v36   ;;  %v3785_v35 = vld [vmem:[%s5194_s6 + $0xc8] sm:$0xff]   ;;  %v3786_v36 = vld [vmem:[%s5194_s6 + $0xd0] sm:$0xff]  }
 0x5d3   : > { %2016 = vperm.xlu1 %3719, %v1798_v52   ;;  %2101 = vperm.xlu0 %3717, %v1815_v18  }
 0x5d7   : > { %2086 = vperm.xlu1 %3719, %v1812_v37   ;;  %2021 = vperm.xlu0 %3717, %v1799_v19   ;;  %v3787_v19 = vld [vmem:[%s5194_s6 + $0xd8] sm:$0xff]  }
 0x5db   : > { %2006 = vperm.xlu1 %3719, %v1796_v40   ;;  %2091 = vperm.xlu0 %3717, %v1813_v41   ;;  %v3788_v40 = vld [vmem:[%s5194_s6 + $0xe0] sm:$0xff]  }
 0x5de   : > { %v3722_v5 = vpop.permute.xlu0 %3721 }
 0x5df   : > { %v3724_v43 = vunpack.i.h.bf16 %v3722_v5  ;;  %v3723_v13 = vunpack.i.l.bf16 %v3722_v5  ;;  %2076 = vperm.xlu1 %3719, %v1810_v42   ;;  %2011 = vperm.xlu0 %3717, %v1797_v28   ;;  %v3789_v28 = vld [vmem:[%s5194_s6 + $0xe8] sm:$0xff]   ;;  %v3790_v5 = vld [vmem:[%s5194_s6 + $0xf0] sm:$0xff]  }
 0x5e1   : > { %v1695_v45 = vpack.c.bf16 %v3724_v43, %v3723_v13 }
 0x5e2   : > { %v3727_v4 = vpop.permute.xlu1 %3726 }
 0x5e3   : > { %v3729_v15 = vunpack.i.h.bf16 %v3727_v4  ;;  %v3728_v46 = vunpack.i.l.bf16 %v3727_v4  ;;  %1996 = vperm.xlu1 %3719, %v1794_v44   ;;  %2081 = vperm.xlu0 %3717, %v1811_v21   ;;  %v3791_v21 = vld [vmem:[%s5194_s6 + $0xf8] sm:$0xff]  }
 0x5e4   : > { %3598 = vmatprep.subr.bf16.mxu1 %v1695_v45 }
 0x5e5   : > { %v1694_v14 = vpack.c.bf16 %v3729_v15, %v3728_v46  ;;  %3599 = vmatpush3.bf16.msra.mxu1 %v1695_v45 }
 0x5e6   : > { %v3732_v50 = vpop.permute.xlu1 %3731 }
 0x5e7   : > { %v3734_v62 = vunpack.i.h.bf16 %v3732_v50  ;;  %v3733_v9 = vunpack.i.l.bf16 %v3732_v50  ;;  %2066 = vperm.xlu1 %3719, %v1808_v47   ;;  %2001 = vperm.xlu0 %3717, %v1795_v48  }
 0x5e8   : > { %3600 = vmatprep.subr.bf16.mxu1 %v1694_v14 }
 0x5e9   : > { %v1693_v7 = vpack.c.bf16 %v3734_v62, %v3733_v9  ;;  %3601 = vmatpush3.bf16.msra.mxu1 %v1694_v14 }
 0x5ea   : > { %v3737_v8 = vpop.permute.xlu0 %3736  ;;  %v4671_v33 = vpop.permute.xlu1 %1976 }
 0x5eb   : > { %v3739_v2 = vunpack.i.h.bf16 %v3737_v8  ;;  %v3738_v11 = vunpack.i.l.bf16 %v3737_v8  ;;  %1986 = vperm.xlu1 %3719, %v1792_v10   ;;  %2071 = vperm.xlu0 %3717, %v1809_v22  }
 0x5ec   : > { %3602 = vmatprep.subr.bf16.mxu1 %v1693_v7 }
 0x5ed   : > { %v1692_v59 = vpack.c.bf16 %v3739_v2, %v3738_v11  ;;  %3603 = vmatpush3.bf16.msra.mxu1 %v1693_v7  ;;  %v3794_v11 = vld [vmem:[%s5195_s7 + $0x4] ss:$16 sps:$4 sm:$0xff]  }
 0x5ee   : > { %v4673_v51 = vpop.permute.xlu0 %1981  ;;  %v4681_v26 = vpop.permute.xlu1 %1896  ;;  %3009 = vmatprep.mubr.bf16.mxu0 %v3794_v11 }
 0x5ef   : > { %1991 = vperm.xlu0 %3717, %v1793_v20   ;;  %3604 = vmatprep.subr.bf16.mxu1 %v1692_v59 }
 0x5f1   : > { %3605 = vmatpush3.bf16.msra.mxu1 %v1692_v59 }
 0x5f2   : > { %v4685_v27 = vpop.permute.xlu0 %1901  ;;  %v4693_v49 = vpop.permute.xlu1 %1966 }
 0x5f4   : > { %3607 = vmatmul.mubr.msk.bf16.vlgmr.msra.gmra.mxu1 %vm774_vm0, %v3761_v0 }
 0x5f5   : > { %3610 = vmatprep.mubr.msk.bf16.mxu1 %vm774_vm0, %v3762_v6 }
 0x5f6   : > { %v4695_v54 = vpop.permute.xlu0 %1971  ;;  %v4699_v38 = vpop.permute.xlu1 %1886 }
 0x5fa   : > { %v4707_v52 = vpop.permute.xlu0 %1891  ;;  %v4711_v18 = vpop.permute.xlu1 %1956 }
 0x5fc   : > { %3611 = vmatmul.mubr.msk.bf16.gmra.mxu1 %vm774_vm0, %v3763_v1 }
 0x5fd   : > { %3614 = vmatprep.mubr.msk.bf16.mxu1 %vm774_vm0, %v3764_v55 }
 0x5fe   : > { %v4713_v37 = vpop.permute.xlu0 %1961  ;;  %v4721_v41 = vpop.permute.xlu1 %1876 }
 0x602   : > { %v4725_v42 = vpop.permute.xlu0 %1881  ;;  %v4733_v43 = vpop.permute.xlu1 %1946 }
 0x604   : > { %3615 = vmatmul.mubr.msk.bf16.gmra.mxu1 %vm774_vm0, %v3765_v3 }
 0x605   : > { %3618 = vmatprep.mubr.msk.bf16.mxu1 %vm774_vm0, %v3766_v29 }
 0x606   : > { %v4735_v13 = vpop.permute.xlu0 %1951  ;;  %v4739_v44 = vpop.permute.xlu1 %1866 }
 0x60a   : > { %v4744_v45 = vpop.permute.xlu0 %1871  ;;  %v4747_v4 = vpop.permute.xlu1 %1936 }
 0x60c   : > { %3619 = vmatmul.mubr.msk.bf16.gmra.mxu1 %vm774_vm0, %v3767_v60 }
 0x60d   : > { %3622 = vmatprep.mubr.msk.bf16.mxu1 %vm774_vm0, %v3768_v30 }
 0x60e   : > { %v4749_v15 = vpop.permute.xlu0 %1941  ;;  %v1857_v46 = vpop.permute.xlu1 %1856 }
 0x612   : > { %v1862_v47 = vpop.permute.xlu0 %1861  ;;  %v4751_v48 = vpop.permute.xlu1 %1926 }
 0x614   : > { %3623 = vmatmul.mubr.msk.bf16.gmra.mxu1 %vm774_vm0, %v3769_v23 }
 0x615   : > { %3626 = vmatprep.mubr.msk.bf16.mxu1 %vm774_vm0, %v3770_v61 }
 0x616   : > { %v4753_v14 = vpop.permute.xlu0 %1931  ;;  %v1847_v50 = vpop.permute.xlu1 %1846 }
 0x61a   : > { %v1852_v62 = vpop.permute.xlu0 %1851  ;;  %v4755_v9 = vpop.permute.xlu1 %1916 }
 0x61c   : > { %3627 = vmatmul.mubr.msk.bf16.gmra.mxu1 %vm774_vm0, %v3771_v25 }
 0x61d   : > { %3630 = vmatprep.mubr.msk.bf16.mxu1 %vm774_vm0, %v3772_v56 }
 0x61e   : > { %v4757_v10 = vpop.permute.xlu0 %1921  ;;  %v1837_v22 = vpop.permute.xlu1 %1836 }
 0x622   : > { %v1842_v7 = vpop.permute.xlu0 %1841  ;;  %v4759_v8 = vpop.permute.xlu1 %1906 }
 0x624   : > { %3631 = vmatmul.mubr.msk.bf16.gmra.mxu1 %vm774_vm0, %v3773_v63 }
 0x625   : > { %3634 = vmatprep.mubr.msk.bf16.mxu1 %vm774_vm0, %v3774_v31 }
 0x626   : > { %v4761_v2 = vpop.permute.xlu0 %1911  ;;  %v1827_v20 = vpop.permute.xlu1 %1826 }
 0x62a   : > { %v1832_v59 = vpop.permute.xlu0 %1831  ;;  %v4766_v0 = vpop.permute.xlu1 %2136 }
 0x62b   : > { %5198 = vst [vmem:[#allocation3_spill] sm:$0xff] %v4766_v0 }
 0x62c   : > { %3635 = vmatmul.mubr.msk.bf16.gmra.mxu1 %vm774_vm0, %v3775_v16 }
 0x62d   : > { %3638 = vmatprep.mubr.msk.bf16.mxu1 %vm774_vm0, %v3776_v57 }
 0x62e   : > { %v4768_v6 = vpop.permute.xlu0 %2141  ;;  %v4770_v1 = vpop.permute.xlu1 %2056 }
 0x62f   : > { %5199 = vst [vmem:[#allocation4_spill] sm:$0xff] %v4768_v6  ;;  %5200 = vst [vmem:[#allocation5_spill] sm:$0xff] %v4770_v1 }
 0x632   : > { %v4772_v55 = vpop.permute.xlu0 %2061  ;;  %v4774_v3 = vpop.permute.xlu1 %2126 }
 0x633   : > { %5201 = vst [vmem:[#allocation6_spill] sm:$0xff] %v4772_v55  ;;  %5202 = vst [vmem:[#allocation7_spill] sm:$0xff] %v4774_v3 }
 0x634   : > { %3639 = vmatmul.mubr.msk.bf16.gmra.mxu1 %vm774_vm0, %v3777_v32 }
 0x635   : > { %3642 = vmatprep.mubr.msk.bf16.mxu1 %vm774_vm0, %v3778_v24 }
 0x636   : > { %v4776_v29 = vpop.permute.xlu0 %2131  ;;  %v4778_v60 = vpop.permute.xlu1 %2046 }
 0x637   : > { %5203 = vst [vmem:[#allocation8_spill] sm:$0xff] %v4776_v29  ;;  %5204 = vst [vmem:[#allocation9_spill] sm:$0xff] %v4778_v60 }
 0x63a   : > { %v4780_v30 = vpop.permute.xlu0 %2051  ;;  %v4782_v61 = vpop.permute.xlu1 %2116 }
 0x63b   : > { %5205 = vst [vmem:[#allocation10_spill] sm:$0xff] %v4780_v30  ;;  %5206 = vst [vmem:[#allocation11_spill] sm:$0xff] %v4782_v61 }
 0x63c   : > { %3643 = vmatmul.mubr.msk.bf16.gmra.mxu1 %vm774_vm0, %v3779_v58 }
 0x63d   : > { %3646 = vmatprep.mubr.msk.bf16.mxu1 %vm774_vm0, %v3780_v17 }
 0x63e   : > { %v4784_v63 = vpop.permute.xlu0 %2121 }
 0x63f   : > { %5207 = vst [vmem:[#allocation12_spill] sm:$0xff] %v4784_v63 }
 0x644   : > { %3647 = vmatmul.mubr.msk.bf16.gmra.mxu1 %vm774_vm0, %v3781_v34  ;;  %v4786_v34 = vpop.permute.xlu1 %2036 }
 0x645   : > { %3650 = vmatprep.mubr.msk.bf16.mxu1 %vm774_vm0, %v3782_v12  ;;  %5208 = vst [vmem:[#allocation13_spill] sm:$0xff] %v4786_v34 }
 0x64c   : > { %3651 = vmatmul.mubr.msk.bf16.gmra.mxu1 %vm774_vm0, %v3783_v39 }
 0x64d   : > { %3654 = vmatprep.mubr.msk.bf16.mxu1 %vm774_vm0, %v3784_v53 }
 0x654   : > { %3655 = vmatmul.mubr.msk.bf16.gmra.mxu1 %vm774_vm0, %v3785_v35 }
 0x655   : > { %3658 = vmatprep.mubr.msk.bf16.mxu1 %vm774_vm0, %v3786_v36  ;;  %v4790_v36 = vpop.permute.xlu0 %2041 }
 0x656   : > { %5210 = vst [vmem:[#allocation15_spill] sm:$0xff] %v4790_v36 }
 0x65c   : > { %3659 = vmatmul.mubr.msk.bf16.gmra.mxu1 %vm774_vm0, %v3787_v19 }
 0x65d   : > { %3662 = vmatprep.mubr.msk.bf16.mxu1 %vm774_vm0, %v3788_v40 }
 0x664   : > { %3663 = vmatmul.mubr.msk.bf16.gmra.mxu1 %vm774_vm0, %v3789_v28 }
 0x665   : > { %3666 = vmatprep.mubr.msk.bf16.mxu1 %vm774_vm0, %v3790_v5 }
 0x66c   : > { %3667 = vmatmul.mubr.msk.bf16.gmra.mxu1 %vm774_vm0, %v3791_v21 }
 0x6b4   : > { %v3608_v23 = vpop.f32.mrf.mxu1 }
 0x6b5   : > { %v2443_v56 = vadd.f32 %v3608_v23, %v1837_v22 }
 0x6b6   : > { %v2434_v25 = vpop.f32.mrf.mxu1 }
 0x6b7   : > { %v2435_v16 = vadd.f32 %v2434_v25, %v1827_v20  ;;  %v2691_v24 = vmax.f32 %v2443_v56, 0.0  ;;  %v4796_v25 = vpop.permute.xlu0 %2111 }
 0x6b8   : > { %v3609_v31 = vpop.f32.mrf.mxu1  ;;  %5213 = vst [vmem:[#allocation18_spill] sm:$0xff] %v4796_v25 }
 0x6b9   : > { %v2446_v57 = vadd.f32 %v3609_v31, %v1842_v7  ;;  %v2689_v39 = vmax.f32 %v2435_v16, 0.0  ;;  %v4794_v7 = vpop.permute.xlu1 %2106 }
 0x6ba   : > { %v2437_v32 = vpop.f32.mrf.mxu1  ;;  %5212 = vst [vmem:[#allocation17_spill] sm:$0xff] %v4794_v7 }
 0x6bb   : > { %v2692_v58 = vmax.f32 %v2446_v57, 0.0  ;;  %v2438_v17 = vadd.f32 %v2437_v32, %v1832_v59 }
 0x6bc   : > { %v3612_v12 = vpop.f32.mrf.mxu1 }
 0x6bd   : > { %v4788_v53 = vpack.c.bf16 %v2692_v58, %v2691_v24  ;;  %v2690_v35 = vmax.f32 %v2438_v17, 0.0  ;;  %v2459_v28 = vadd.f32 %v3612_v12, %v1857_v46  ;;  %v4808_v24 = vpop.permute.xlu0 %2031 }
 0x6be   : > { %v2450_v19 = vpop.f32.mrf.mxu1  ;;  %5216 = vst [vmem:[#allocation21_spill] sm:$0xff] %v4808_v24 }
 0x6bf   : > { %5209 = vst [vmem:[#allocation14_spill] sm:$0xff] %v4788_v53  ;;  %v4792_v40 = vpack.c.bf16 %v2690_v35, %v2689_v39  ;;  %v2451_v21 = vadd.f32 %v2450_v19, %v1847_v50  ;;  %v2695_v20 = vmax.f32 %v2459_v28, 0.0  ;;  %v4806_v50 = vpop.permute.xlu1 %2026 }
 0x6c0   : > { %v3613_v5 = vpop.f32.mrf.mxu1  ;;  %5215 = vst [vmem:[#allocation20_spill] sm:$0xff] %v4806_v50 }
 0x6c1   : > { %5211 = vst [vmem:[#allocation16_spill] sm:$0xff] %v4792_v40  ;;  %v2462_v22 = vadd.f32 %v3613_v5, %v1862_v47  ;;  %v2693_v31 = vmax.f32 %v2451_v21, 0.0  ;;  %v4814_v39 = vpop.permute.xlu0 %2101 }
 0x6c2   : > { %v2453_v11 = vpop.f32.mrf.mxu1  ;;  %5218 = vst [vmem:[#allocation23_spill] sm:$0xff] %v4814_v39 }
 0x6c3   : > { %v2696_v59 = vmax.f32 %v2462_v22, 0.0  ;;  %v2454_v23 = vadd.f32 %v2453_v11, %v1852_v62  ;;  %v4812_v17 = vpop.permute.xlu1 %2096 }
 0x6c4   : > { %v4798_v56 = vpop.f32.mrf.mxu1  ;;  %5217 = vst [vmem:[#allocation22_spill] sm:$0xff] %v4812_v17 }
 0x6c5   : > { %v4800_v16 = vpack.c.bf16 %v2696_v59, %v2695_v20  ;;  %v2694_v57 = vmax.f32 %v2454_v23, 0.0  ;;  %v4820_v21 = vpop.permute.xlu0 %2021 }
 0x6c6   : > { %v4802_v32 = vpop.f32.mrf.mxu1 }
 0x6c7   : > { %v4804_v46 = vpack.c.bf16 %v2694_v57, %v2693_v31  ;;  %v4816_v28 = vpop.permute.xlu1 %2016 }
 0x6c8   : > { %v3617_v47 = vpop.f32.mrf.mxu1 }
 0x6c9   : > { %5214 = vst [vmem:[#allocation19_spill] sm:$0xff] %v4804_v46  ;;  %v4830_v23 = vpop.permute.xlu0 %2091 }
 0x6ca   : > { %v4810_v58 = vpop.f32.mrf.mxu1  ;;  %5221 = vst [vmem:[#allocation26_spill] sm:$0xff] %v4830_v23 }
 0x6cb   : > { %v4826_v20 = vpop.permute.xlu1 %2086 }
 0x6cc   : > { %v3620_v62 = vpop.f32.mrf.mxu1  ;;  %5220 = vst [vmem:[#allocation25_spill] sm:$0xff] %v4826_v20 }
 0x6cd   : > { %v4838_v39 = vpop.permute.xlu0 %2011  ;;  %v2491_v3 = vadd.f32 %v3620_v62, %v4681_v26 }
 0x6ce   : > { %v2482_v12 = vpop.f32.mrf.mxu1 }
 0x6cf   : > { %v4836_v17 = vpop.permute.xlu1 %2006  ;;  %v2703_v26 = vmax.f32 %v2491_v3, 0.0 }
 0x6d0   : > { %v3621_v35 = vpop.f32.mrf.mxu1 }
 0x6d1   : > { %v4844_v20 = vpop.permute.xlu0 %2081  ;;  %v2494_v63 = vadd.f32 %v3621_v35, %v4685_v27 }
 0x6d2   : > { %v2485_v19 = vpop.f32.mrf.mxu1  ;;  %5223 = vst [vmem:[#allocation28_spill] sm:$0xff] %v4844_v20 }
 0x6d3   : > { %v4842_v34 = vpop.permute.xlu1 %2076  ;;  %v2704_v20 = vmax.f32 %v2494_v63, 0.0  ;;  %v2486_v40 = vadd.f32 %v2485_v19, %v4707_v52 }
 0x6d4   : > { %v4818_v5 = vpop.f32.mrf.mxu1  ;;  %5222 = vst [vmem:[#allocation27_spill] sm:$0xff] %v4842_v34 }
 0x6d5   : > { %v2002_v29 = vpop.permute.xlu0 %2001  ;;  %v2792_v62 = vpack.c.bf16 %v2704_v20, %v2703_v26 }
 0x6d6   : > { %v4822_v22 = vpop.f32.mrf.mxu1 }
 0x6d7   : > { %5219 = vst [vmem:[#allocation24_spill] sm:$0xff] %v4822_v22  ;;  %v1997_v23 = vpop.permute.xlu1 %1996 }
 0x6d8   : > { %v4824_v11 = vpop.f32.mrf.mxu1 }
 0x6da   : > { %v4828_v59 = vpop.f32.mrf.mxu1 }
 0x6db   : > { %v4851_v55 = vpop.permute.xlu1 %2066 }
 0x6dc   : > { %v4832_v31 = vpop.f32.mrf.mxu1 }
 0x6de   : > { %v4834_v57 = vpop.f32.mrf.mxu1 }
 0x6df   : > { %v1987_v3 = vpop.permute.xlu1 %1986 }
 0x6e0   : > { %v3629_v50 = vpop.f32.mrf.mxu1 }
 0x6e1   : > { %v2526_v19 = vadd.f32 %v3629_v50, %v4749_v15 }
 0x6e2   : > { %v4840_v24 = vpop.f32.mrf.mxu1 }
 0x6e4   : > { %v3632_v7 = vpop.f32.mrf.mxu1 }
 0x6e6   : > { %v2530_v25 = vpop.f32.mrf.mxu1 }
 0x6e8   : > { %v3633_v36 = vpop.f32.mrf.mxu1 }
 0x6e9   : > { %v2542_v53 = vadd.f32 %v3633_v36, %v4713_v37  ;;  %v2702_v37 = vmax.f32 %v2486_v40, 0.0 }
 0x6ea   : > { %v2533_v61 = vpop.f32.mrf.mxu1 }
 0x6eb   : > { %v2716_v36 = vmax.f32 %v2542_v53, 0.0 }
 0x6ec   : > { %v3636_v60 = vpop.f32.mrf.mxu1 }
 0x6ed   : > { %v2555_v6 = vadd.f32 %v3636_v60, %v4671_v33  ;;  %v4856_v33 = vpop.permute.xlu0 %2071  ;;  %v2483_v60 = vadd.f32 %v2482_v12, %v4699_v38  ;;  %v2475_v38 = vadd.f32 %v4798_v56, %v4721_v41 }
 0x6ee   : > { %v2546_v30 = vpop.f32.mrf.mxu1 }
 0x6ef   : > { %v2547_v0 = vadd.f32 %v2546_v30, %v4693_v49  ;;  %v2719_v22 = vmax.f32 %v2555_v6, 0.0  ;;  %v2539_v49 = vadd.f32 %v3632_v7, %v4711_v18  ;;  %v2701_v18 = vmax.f32 %v2483_v60, 0.0 }
 0x6f0   : > { %v3637_v1 = vpop.f32.mrf.mxu1 }
 0x6f1   : > { %v2558_v34 = vadd.f32 %v3637_v1, %v4673_v51  ;;  %v2478_v1 = vadd.f32 %v3617_v47, %v4725_v42  ;;  %v2717_v30 = vmax.f32 %v2547_v0, 0.0  ;;  %v2715_v7 = vmax.f32 %v2539_v49, 0.0  ;;  %v1992_v53 = vpop.permute.xlu0 %1991 }
 0x6f2   : > { %v2549_v46 = vpop.f32.mrf.mxu1  ;;  %v2531_v0 = vadd.f32 %v2530_v25, %v4733_v43  ;;  %v2467_v43 = vadd.f32 %v4802_v32, %v4739_v44  ;;  %v2712_v49 = vmax.f32 %v2526_v19, 0.0 }
 0x6f3   : > { %v2720_v27 = vmax.f32 %v2558_v34, 0.0  ;;  %v2550_v35 = vadd.f32 %v2549_v46, %v4695_v54  ;;  %v2534_v34 = vadd.f32 %v2533_v61, %v4735_v13  ;;  %v2700_v42 = vmax.f32 %v2478_v1, 0.0 }
 0x6f4   : > { %v3640_v51 = vpop.f32.mrf.mxu1  ;;  %v2470_v13 = vadd.f32 %v4810_v58, %v4744_v45  ;;  %v2791_v61 = vpack.c.bf16 %v2702_v37, %v2701_v18  ;;  %v2713_v26 = vmax.f32 %v2531_v0, 0.0  ;;  %v2518_v1 = vadd.f32 %v4840_v24, %v4753_v14 }
 0x6f5   : > { %v2800_v63 = vpack.c.bf16 %v2720_v27, %v2719_v22  ;;  %v2718_v52 = vmax.f32 %v2550_v35, 0.0  ;;  %v2571_v46 = vadd.f32 %v3640_v51, %v1997_v23  ;;  %v2798_v22 = vpack.c.bf16 %v2716_v36, %v2715_v7 }
 0x6f6   : > { %v2562_v6 = vpop.f32.mrf.mxu1  ;;  %v2714_v41 = vmax.f32 %v2534_v34, 0.0  ;;  %v2699_v35 = vmax.f32 %v2475_v38, 0.0  ;;  %v2698_v60 = vmax.f32 %v2470_v13, 0.0  ;;  %v2697_v32 = vmax.f32 %v2467_v43, 0.0  ;;  %v5225_v13 = vld [vmem:[#allocation19_spill] sm:$0xff] }
 0x6f7   : > { %v2799_v54 = vpack.c.bf16 %v2718_v52, %v2717_v30  ;;  %3470 = vmatprep.subr.bf16.mxu0 %v2800_v63  ;;  %v2563_v47 = vadd.f32 %v2562_v6, %v1987_v3  ;;  %v2723_v56 = vmax.f32 %v2571_v46, 0.0  ;;  %v2515_v52 = vadd.f32 %v4834_v57, %v4751_v48  ;;  %v3797_v43 = vld [vmem:[%s5195_s7 + $0x20] ss:$16 sps:$4 sm:$0xff]  }
 0x6f8   : > { %v3641_v12 = vpop.f32.mrf.mxu1  ;;  %3471 = vmatpush3.bf16.msra.mxu0 %v2792_v62  ;;  %v2790_v50 = vpack.c.bf16 %v2700_v42, %v2699_v35  ;;  %v2797_v30 = vpack.c.bf16 %v2714_v41, %v2713_v26  ;;  %v2789_v36 = vpack.c.bf16 %v2698_v60, %v2697_v32  ;;  %v2510_v14 = vadd.f32 %v4824_v11, %v4757_v10  ;;  %v5227_v41 = vld [vmem:[#allocation16_spill] sm:$0xff] }
 0x6f9   : > { %v2574_v40 = vadd.f32 %v3641_v12, %v2002_v29  ;;  %3472 = vmatprep.subr.bf16.mxu0 %v2799_v54  ;;  %v2523_v29 = vadd.f32 %v4832_v31, %v4747_v4  ;;  %v2721_v45 = vmax.f32 %v2563_v47, 0.0  ;;  %v2710_v34 = vmax.f32 %v2518_v1, 0.0 }
 0x6fa   : > { %v2565_v20 = vpop.f32.mrf.mxu1  ;;  %v2507_v3 = vadd.f32 %v4818_v5, %v4755_v9  ;;  %v2708_v11 = vmax.f32 %v2510_v14, 0.0  ;;  %v2502_v18 = vadd.f32 %v4828_v59, %v4761_v2  ;;  %v5224_v5 = vld [vmem:[#allocation24_spill] sm:$0xff]  ;;  %v5230_v14 = vld [vmem:[#allocation5_spill] sm:$0xff] }
 0x6fb   : > { %v2724_v23 = vmax.f32 %v2574_v40, 0.0  ;;  %v2566_v27 = vadd.f32 %v2565_v20, %v1992_v53  ;;  %v2711_v31 = vmax.f32 %v2523_v29, 0.0  ;;  %v2499_v42 = vadd.f32 %v5224_v5, %v4759_v8  ;;  %v3792_v8 = vld [vmem:[%s5195_s7] ss:$16 sps:$4 sm:$0xff]   ;;  %v5235_v5 = vld [vmem:[#allocation8_spill] sm:$0xff] }
 0x6fc   : > { %v3644_v25 = vpop.f32.mrf.mxu1  ;;  %3473 = vmatpush3.bf16.msra.mxu0 %v2791_v61  ;;  %v2707_v9 = vmax.f32 %v2507_v3, 0.0  ;;  %v2706_v40 = vmax.f32 %v2502_v18, 0.0 }
 0x6fd   : > { %v4872_v58 = vpack.c.bf16 %v2724_v23, %v2723_v56  ;;  %v2722_v15 = vmax.f32 %v2566_v27, 0.0  ;;  %3474 = vmatprep.subr.bf16.mxu0 %v2798_v22  ;;  %v2587_v4 = vadd.f32 %v3644_v25, %v4816_v28  ;;  %v2796_v24 = vpack.c.bf16 %v2712_v49, %v2711_v31  ;;  %v5226_v22 = vld [vmem:[#allocation14_spill] sm:$0xff]  ;;  %v3795_v56 = vld [vmem:[%s5195_s7 + $0x24] ss:$16 sps:$4 sm:$0xff]  }
 0x6fe   : > { %v2578_v51 = vpop.f32.mrf.mxu1  ;;  %v2794_v47 = vpack.c.bf16 %v2708_v11, %v2707_v9  ;;  %v2705_v2 = vmax.f32 %v2499_v42, 0.0  ;;  %v3798_v25 = vld [vmem:[%s5195_s7 + $0x44] ss:$16 sps:$4 sm:$0xff]   ;;  %v5234_v11 = vld [vmem:[#allocation12_spill] sm:$0xff] }
 0x6ff   : > { %v4876_v44 = vpack.c.bf16 %v2722_v15, %v2721_v45  ;;  %v2579_v62 = vadd.f32 %v2578_v51, %v4836_v17  ;;  %v2727_v28 = vmax.f32 %v2587_v4, 0.0  ;;  %v2709_v17 = vmax.f32 %v2515_v52, 0.0  ;;  %v3801_v49 = vld [vmem:[%s5195_s7 + $0x64] ss:$16 sps:$4 sm:$0xff]   ;;  %v3803_v4 = vld [vmem:[%s5195_s7 + $0x60] ss:$16 sps:$4 sm:$0xff]  }
 0x700   : > { %v3645_v63 = vpop.f32.mrf.mxu1  ;;  %3475 = vmatpush3.bf16.msra.mxu0 %v2790_v50  ;;  %v2793_v61 = vpack.c.bf16 %v2706_v40, %v2705_v2  ;;  %v3800_v50 = vld [vmem:[%s5195_s7 + $0x40] ss:$16 sps:$4 sm:$0xff]   ;;  %v3804_v31 = vld [vmem:[%s5195_s7 + $0x84] ss:$16 sps:$4 sm:$0xff]  }
 0x701   : > { %v2590_v37 = vadd.f32 %v3645_v63, %v4820_v21  ;;  %3476 = vmatprep.subr.bf16.mxu0 %v2797_v30  ;;  %v2725_v21 = vmax.f32 %v2579_v62, 0.0  ;;  %v2795_v7 = vpack.c.bf16 %v2710_v34, %v2709_v17  ;;  %v5228_v63 = vld [vmem:[#allocation6_spill] sm:$0xff]  ;;  %v5231_v34 = vld [vmem:[#allocation7_spill] sm:$0xff] }
 0x702   : > { %v2581_v6 = vpop.f32.mrf.mxu1  ;;  %v5233_v17 = vld [vmem:[#allocation10_spill] sm:$0xff]  ;;  %v3807_v2 = vld [vmem:[%s5195_s7 + $0xa4] ss:$16 sps:$4 sm:$0xff]  }
 0x703   : > { %v2728_v54 = vmax.f32 %v2590_v37, 0.0  ;;  %v2582_v46 = vadd.f32 %v2581_v6, %v4838_v39  ;;  %v5229_v37 = vld [vmem:[#allocation3_spill] sm:$0xff] }
 0x704   : > { %v4888_v48 = vpop.f32.mrf.mxu1  ;;  %3477 = vmatpush3.bf16.msra.mxu0 %v2789_v36 }
 0x705   : > { %v4890_v57 = vpack.c.bf16 %v2728_v54, %v2727_v28  ;;  %v2726_v38 = vmax.f32 %v2582_v46, 0.0  ;;  %3478 = vmatprep.subr.bf16.mxu0 %v2796_v24  ;;  %v5232_v54 = vld [vmem:[#allocation4_spill] sm:$0xff] }
 0x706   : > { %v4892_v10 = vpop.f32.mrf.mxu1 }
 0x707   : > { %v4896_v39 = vpack.c.bf16 %v2726_v38, %v2725_v21 }
 0x708   : > { %v4898_v12 = vpop.f32.mrf.mxu1  ;;  %3479 = vmatpush3.bf16.msra.mxu0 %v4800_v16 }
 0x709   : > { %3480 = vmatprep.subr.bf16.mxu0 %v2795_v7 }
 0x70a   : > { %v4903_v0 = vpop.f32.mrf.mxu1 }
 0x70c   : > { %v3652_v53 = vpop.f32.mrf.mxu1  ;;  %3481 = vmatpush3.bf16.msra.mxu0 %v5225_v13 }
 0x70d   : > { %3482 = vmatprep.subr.bf16.mxu0 %v2794_v47  ;;  %v2619_v24 = vadd.f32 %v3652_v53, %v5230_v14  ;;  %v3806_v47 = vld [vmem:[%s5195_s7 + $0x80] ss:$16 sps:$4 sm:$0xff]  }
 0x70e   : > { %v2610_v59 = vpop.f32.mrf.mxu1  ;;  %v5236_v53 = vld [vmem:[#allocation9_spill] sm:$0xff]  ;;  %v5243_v14 = vld [vmem:[#allocation23_spill] sm:$0xff] }
 0x70f   : > { %v2735_v40 = vmax.f32 %v2619_v24, 0.0  ;;  %v2611_v13 = vadd.f32 %v2610_v59, %v5236_v53  ;;  %v5240_v59 = vld [vmem:[#allocation13_spill] sm:$0xff] }
 0x710   : > { %v3653_v19 = vpop.f32.mrf.mxu1  ;;  %3483 = vmatpush3.bf16.msra.mxu0 %v5226_v22 }
 0x711   : > { %3484 = vmatprep.subr.bf16.mxu0 %v2793_v61  ;;  %v2622_v52 = vadd.f32 %v3653_v19, %v5228_v63  ;;  %v5237_v61 = vld [vmem:[#allocation11_spill] sm:$0xff]  ;;  %v5241_v63 = vld [vmem:[#allocation17_spill] sm:$0xff] }
 0x712   : > { %v2613_v16 = vpop.f32.mrf.mxu1 }
 0x713   : > { %v2736_v3 = vmax.f32 %v2622_v52, 0.0  ;;  %v2614_v21 = vadd.f32 %v2613_v16, %v5233_v17 }
 0x714   : > { %v4910_v20 = vpop.f32.mrf.mxu1  ;;  %3485 = vmatpush3.bf16.msra.mxu0 %v5227_v41  ;;  %v5238_v41 = vld [vmem:[#allocation15_spill] sm:$0xff] }
 0x716   : > { %v4916_v23 = vpop.f32.mrf.mxu1 }
 0x717   : > { %3010 = vmatmul.mubr.bf16.vlgmr.msra.gmra.mxu0 %v3792_v8 }
 0x718   : > { %v4918_v27 = vpop.f32.mrf.mxu1  ;;  %3017 = vmatprep.mubr.bf16.mxu0 %v3795_v56  ;;  %v2606_v56 = vadd.f32 %v4898_v12, %v5238_v41  ;;  %v5242_v12 = vld [vmem:[#allocation21_spill] sm:$0xff] }
 0x71a   : > { %v4920_v35 = vpop.f32.mrf.mxu1 }
 0x71c   : > { %v4925_v29 = vpop.f32.mrf.mxu1 }
 0x71e   : > { %v4930_v26 = vpop.f32.mrf.mxu1 }
 0x71f   : > { %3018 = vmatmul.mubr.bf16.gmra.mxu0 %v3797_v43  ;;  %v2808_v43 = vpack.c.bf16 %v2736_v3, %v2735_v40 }
 0x720   : > { %v3661_v45 = vpop.f32.mrf.mxu1  ;;  %3025 = vmatprep.mubr.bf16.mxu0 %v3798_v25  ;;  %v2734_v25 = vmax.f32 %v2614_v21, 0.0 }
 0x722   : > { %v4932_v15 = vpop.f32.mrf.mxu1 }
 0x724   : > { %v3664_v60 = vpop.f32.mrf.mxu1 }
 0x725   : > { %v2667_v19 = vadd.f32 %v3664_v60, %v5237_v61 }
 0x726   : > { %v2658_v51 = vpop.f32.mrf.mxu1 }
 0x727   : > { %3026 = vmatmul.mubr.bf16.gmra.mxu0 %v3800_v50  ;;  %v2747_v60 = vmax.f32 %v2667_v19, 0.0  ;;  %v2659_v52 = vadd.f32 %v2658_v51, %v5241_v63  ;;  %v3810_v51 = vld [vmem:[%s5195_s7 + $0xc4] ss:$16 sps:$4 sm:$0xff]  }
 0x728   : > { %v3665_v1 = vpop.f32.mrf.mxu1  ;;  %3033 = vmatprep.mubr.bf16.mxu0 %v3801_v49  ;;  %v5239_v49 = vld [vmem:[#allocation18_spill] sm:$0xff] }
 0x729   : > { %v2670_v18 = vadd.f32 %v3665_v1, %v5234_v11  ;;  %v2745_v3 = vmax.f32 %v2659_v52, 0.0 }
 0x72a   : > { %v2661_v30 = vpop.f32.mrf.mxu1 }
 0x72b   : > { %v2748_v50 = vmax.f32 %v2670_v18, 0.0  ;;  %v2662_v1 = vadd.f32 %v2661_v30, %v5239_v49  ;;  %v2654_v30 = vadd.f32 %v3661_v45, %v5243_v14  ;;  %v3830_v49 = vld [vmem:[%s5195_s7 + $0x88] ss:$16 sps:$4 sm:$0xff]  }
 0x72c   : > { %v3668_v32 = vpop.f32.mrf.mxu1 }
 0x72d   : > { %v2683_v36 = vadd.f32 %v3668_v32, %v5229_v37  ;;  %v2603_v32 = vadd.f32 %v4888_v48, %v5240_v59  ;;  %v2598_v37 = vadd.f32 %v4903_v0, %v5242_v12  ;;  %v2814_v24 = vpack.c.bf16 %v2748_v50, %v2747_v60  ;;  %v3809_v48 = vld [vmem:[%s5195_s7 + $0xa0] ss:$16 sps:$4 sm:$0xff]   ;;  %v3828_v50 = vld [vmem:[%s5195_s7 + $0x8c] ss:$16 sps:$4 sm:$0xff]   ;;  %v3839_v60 = vld [vmem:[%s5195_s7 + $0xe8] ss:$16 sps:$4 sm:$0xff]  }
 0x72e   : > { %v2674_v62 = vpop.f32.mrf.mxu1  ;;  %v2744_v21 = vmax.f32 %v2654_v30, 0.0  ;;  %v3834_v59 = vld [vmem:[%s5195_s7 + $0xcc] ss:$16 sps:$4 sm:$0xff]  }
 0x72f   : > { %3034 = vmatmul.mubr.bf16.gmra.mxu0 %v3803_v4  ;;  %v2675_v28 = vadd.f32 %v2674_v62, %v5231_v34  ;;  %v2751_v7 = vmax.f32 %v2683_v36, 0.0  ;;  %v2732_v62 = vmax.f32 %v2606_v56, 0.0  ;;  %v2731_v34 = vmax.f32 %v2603_v32, 0.0  ;;  %v3836_v32 = vld [vmem:[%s5195_s7 + $0xc8] ss:$16 sps:$4 sm:$0xff]  }
 0x730   : > { %v3669_v6 = vpop.f32.mrf.mxu1  ;;  %3041 = vmatprep.mubr.bf16.mxu0 %v3804_v31  ;;  %v2733_v31 = vmax.f32 %v2611_v13, 0.0  ;;  %v2730_v17 = vmax.f32 %v2598_v37, 0.0  ;;  %v3813_v13 = vld [vmem:[%s5195_s7 + $0xe4] ss:$16 sps:$4 sm:$0xff]  }
 0x731   : > { %v2686_v46 = vadd.f32 %v3669_v6, %v5232_v54  ;;  %v2749_v22 = vmax.f32 %v2675_v28, 0.0  ;;  %v2746_v6 = vmax.f32 %v2662_v1, 0.0  ;;  %v5244_v28 = vld [vmem:[#allocation20_spill] sm:$0xff]  ;;  %v2806_v45 = vpack.c.bf16 %v2732_v62, %v2731_v34 }
 0x732   : > { %v2677_v38 = vpop.f32.mrf.mxu1  ;;  %v2807_v36 = vpack.c.bf16 %v2734_v25, %v2733_v31  ;;  %v2595_v54 = vadd.f32 %v4892_v10, %v5244_v28  ;;  %v3827_v25 = vld [vmem:[%s5195_s7 + $0x68] ss:$16 sps:$4 sm:$0xff]   ;;  %v3831_v1 = vld [vmem:[%s5195_s7 + $0xac] ss:$16 sps:$4 sm:$0xff]  }
 0x733   : > { %v2752_v9 = vmax.f32 %v2686_v46, 0.0  ;;  %v2678_v42 = vadd.f32 %v2677_v38, %v5235_v5  ;;  %v5245_v46 = vld [vmem:[#allocation22_spill] sm:$0xff]  ;;  %v2813_v18 = vpack.c.bf16 %v2746_v6, %v2745_v3 }
 0x734   : > { %v2651_v0 = vadd.f32 %v4925_v29, %v5245_v46  ;;  %v5246_v38 = vld [vmem:[#allocation26_spill] sm:$0xff]  ;;  %v5248_v29 = vld [vmem:[#allocation28_spill] sm:$0xff] }
 0x735   : > { %v2816_v16 = vpack.c.bf16 %v2752_v9, %v2751_v7  ;;  %v2750_v8 = vmax.f32 %v2678_v42, 0.0  ;;  %v2646_v11 = vadd.f32 %v4932_v15, %v5246_v38  ;;  %v2729_v7 = vmax.f32 %v2595_v54, 0.0  ;;  %v5247_v9 = vld [vmem:[#allocation25_spill] sm:$0xff]  ;;  %v3837_v31 = vld [vmem:[%s5195_s7 + $0xec] ss:$16 sps:$4 sm:$0xff]  }
 0x736   : > { %v2743_v10 = vmax.f32 %v2651_v0, 0.0  ;;  %v2643_v5 = vadd.f32 %v4930_v26, %v5247_v9  ;;  %v3812_v15 = vld [vmem:[%s5195_s7 + $0xc0] ss:$16 sps:$4 sm:$0xff]  }
 0x737   : > { %v2815_v4 = vpack.c.bf16 %v2750_v8, %v2749_v22  ;;  %3042 = vmatmul.mubr.bf16.gmra.mxu0 %v3806_v47  ;;  %3534 = vmatprep.subr.bf16.mxu0 %v2816_v16  ;;  %v2805_v42 = vpack.c.bf16 %v2730_v17, %v2729_v7  ;;  %v2638_v47 = vadd.f32 %v4918_v27, %v5248_v29  ;;  %v2742_v53 = vmax.f32 %v2646_v11, 0.0 }
 0x738   : > { %3535 = vmatpush3.bf16.msra.mxu0 %v2808_v43  ;;  %3049 = vmatprep.mubr.bf16.mxu0 %v3807_v2  ;;  %v2812_v40 = vpack.c.bf16 %v2744_v21, %v2743_v10  ;;  %v5249_v2 = vld [vmem:[#allocation27_spill] sm:$0xff]  ;;  %v2741_v26 = vmax.f32 %v2643_v5, 0.0  ;;  %v2630_v27 = vadd.f32 %v4920_v35, %v4856_v33  ;;  %v2627_v8 = vadd.f32 %v4916_v23, %v4851_v55  ;;  %v3818_v33 = vld [vmem:[%s5195_s7 + $0xc] ss:$16 sps:$4 sm:$0xff]   ;;  %v3816_v55 = vld [vmem:[%s5195_s7 + $0x8] ss:$16 sps:$4 sm:$0xff]  }
 0x739   : > { %3536 = vmatprep.subr.bf16.mxu0 %v2815_v4  ;;  %v2635_v61 = vadd.f32 %v4910_v20, %v5249_v2  ;;  %v2740_v19 = vmax.f32 %v2638_v47, 0.0  ;;  %v3815_v20 = vld [vmem:[%s5195_s7 + $0xe0] ss:$16 sps:$4 sm:$0xff]   ;;  %v3821_v23 = vld [vmem:[%s5195_s7 + $0x28] ss:$16 sps:$4 sm:$0xff]  }
 0x73a   : > { %v2811_v22 = vpack.c.bf16 %v2742_v53, %v2741_v26  ;;  %v2738_v56 = vmax.f32 %v2630_v27, 0.0  ;;  %v2737_v35 = vmax.f32 %v2627_v8, 0.0  ;;  %v3825_v43 = vld [vmem:[%s5195_s7 + $0x6c] ss:$16 sps:$4 sm:$0xff]   ;;  %v3833_v4 = vld [vmem:[%s5195_s7 + $0xa8] ss:$16 sps:$4 sm:$0xff]  }
 0x73b   : > { %v2739_v16 = vmax.f32 %v2635_v61, 0.0 }
 0x73c   : > { %3537 = vmatpush3.bf16.msra.mxu0 %v2807_v36 }
 0x73d   : > { %3538 = vmatprep.subr.bf16.mxu0 %v2814_v24  ;;  %v2810_v41 = vpack.c.bf16 %v2740_v19, %v2739_v16 }
 0x73f   : > { %3050 = vmatmul.mubr.bf16.gmra.mxu0 %v3809_v48 }
 0x740   : > { %3539 = vmatpush3.bf16.msra.mxu0 %v2806_v45  ;;  %3057 = vmatprep.mubr.bf16.mxu0 %v3810_v51 }
 0x741   : > { %3540 = vmatprep.subr.bf16.mxu0 %v2813_v18 }
 0x744   : > { %3541 = vmatpush3.bf16.msra.mxu0 %v2805_v42 }
 0x745   : > { %3542 = vmatprep.subr.bf16.mxu0 %v2812_v40 }
 0x747   : > { %3058 = vmatmul.mubr.bf16.gmra.mxu0 %v3812_v15 }
 0x748   : > { %3543 = vmatpush3.bf16.msra.mxu0 %v4890_v57  ;;  %3065 = vmatprep.mubr.bf16.mxu0 %v3813_v13  ;;  %v2809_v57 = vpack.c.bf16 %v2738_v56, %v2737_v35 }
 0x749   : > { %3544 = vmatprep.subr.bf16.mxu0 %v2811_v22 }
 0x74c   : > { %3545 = vmatpush3.bf16.msra.mxu0 %v4896_v39  ;;  %v3819_v39 = vld [vmem:[%s5195_s7 + $0x2c] ss:$16 sps:$4 sm:$0xff]  }
 0x74d   : > { %3546 = vmatprep.subr.bf16.mxu0 %v2810_v41 }
 0x74f   : > { %3066 = vmatmul.mubr.bf16.gmra.mxu0 %v3815_v20 }
 0x750   : > { %3547 = vmatpush3.bf16.msra.mxu0 %v4872_v58  ;;  %3106 = vmatprep.mubr.bf16.mxu0 %v3818_v33  ;;  %v3822_v58 = vld [vmem:[%s5195_s7 + $0x4c] ss:$16 sps:$4 sm:$0xff]  }
 0x751   : > { %3548 = vmatprep.subr.bf16.mxu0 %v2809_v57 }
 0x754   : > { %3549 = vmatpush3.bf16.msra.mxu0 %v4876_v44  ;;  %v3824_v44 = vld [vmem:[%s5195_s7 + $0x48] ss:$16 sps:$4 sm:$0xff]  }
 0x757   : > { %3107 = vmatmul.mubr.bf16.vlgmr.msra.gmra.mxu0 %v3816_v55 }
 0x758   : > { %3114 = vmatprep.mubr.bf16.mxu0 %v3819_v39 }
 0x75f   : > { %3115 = vmatmul.mubr.bf16.gmra.mxu0 %v3821_v23  ;;  %v3171_v23 = vld [vmem:[%s5196_s8 + $0x380] sm:$0xff] }
 0x760   : > { %3122 = vmatprep.mubr.bf16.mxu0 %v3822_v58 }
 0x767   : > { %3123 = vmatmul.mubr.bf16.gmra.mxu0 %v3824_v44 }
 0x768   : > { %3130 = vmatprep.mubr.bf16.mxu0 %v3825_v43 }
 0x76f   : > { %3131 = vmatmul.mubr.bf16.gmra.mxu0 %v3827_v25 }
 0x770   : > { %3138 = vmatprep.mubr.bf16.mxu0 %v3828_v50 }
 0x777   : > { %3139 = vmatmul.mubr.bf16.gmra.mxu0 %v3830_v49  ;;  %v3172_v49 = vld [vmem:[%s5196_s8 + $0x388] sm:$0xff] }
 0x778   : > { %3146 = vmatprep.mubr.bf16.mxu0 %v3831_v1 }
 0x77f   : > { %3147 = vmatmul.mubr.bf16.gmra.mxu0 %v3833_v4 }
 0x780   : > { %3154 = vmatprep.mubr.bf16.mxu0 %v3834_v59 }
 0x787   : > { %3155 = vmatmul.mubr.bf16.gmra.mxu0 %v3836_v32 }
 0x788   : > { %3162 = vmatprep.mubr.bf16.mxu0 %v3837_v31 }
 0x78f   : > { %3163 = vmatmul.mubr.bf16.gmra.mxu0 %v3839_v60  ;;  %v3173_v60 = vld [vmem:[%s5196_s8 + $0x390] sm:$0xff] }
 0x7d7   : > { %v3486_v63 = vpop.f32.mrf.mxu0 }
 0x7d9   : > { %v3487_v52 = vpop.f32.mrf.mxu0 }
 0x7da   : > { %v3488_v62 = vadd.f32 %v3487_v52, %v3486_v63 }
 0x7db   : > { %v3489_v12 = vpop.f32.mrf.mxu0 }
 0x7dd   : > { %v3490_v37 = vpop.f32.mrf.mxu0 }
 0x7de   : > { %v3491_v36 = vadd.f32 %v3490_v37, %v3489_v12 }
 0x7df   : > { %v3492_v14 = vpop.f32.mrf.mxu0 }
 0x7e1   : > { %v3493_v30 = vpop.f32.mrf.mxu0 }
 0x7e2   : > { %v3494_v24 = vadd.f32 %v3493_v30, %v3492_v14  ;;  %v3174_v14 = vld [vmem:[%s5196_s8 + $0x398] sm:$0xff] }
 0x7e3   : > { %v3495_v6 = vpop.f32.mrf.mxu0 }
 0x7e5   : > { %v3496_v48 = vpop.f32.mrf.mxu0 }
 0x7e6   : > { %v5054_v34 = vadd.f32 %v3496_v48, %v3495_v6 }
 0x7e7   : > { %v3498_v28 = vpop.f32.mrf.mxu0 }
 0x7e9   : > { %v3499_v54 = vpop.f32.mrf.mxu0 }
 0x7ea   : > { %v5056_v51 = vadd.f32 %v3499_v54, %v3498_v28 }
 0x7eb   : > { %v3501_v46 = vpop.f32.mrf.mxu0 }
 0x7ed   : > { %v3502_v0 = vpop.f32.mrf.mxu0 }
 0x7ee   : > { %v5058_v3 = vadd.f32 %v3502_v0, %v3501_v46 }
 0x7ef   : > { %v3504_v45 = vpop.f32.mrf.mxu0 }
 0x7f1   : > { %v3505_v17 = vpop.f32.mrf.mxu0 }
 0x7f2   : > { %v5060_v21 = vadd.f32 %v3505_v17, %v3504_v45 }
 0x7f3   : > { %v3507_v38 = vpop.f32.mrf.mxu0 }
 0x7f5   : > { %v3508_v11 = vpop.f32.mrf.mxu0 }
 0x7f6   : > { %v5062_v18 = vadd.f32 %v3508_v11, %v3507_v38 }
 0x7f7   : > { %v3510_v7 = vpop.f32.mrf.mxu0 }
 0x7f9   : > { %v3511_v10 = vpop.f32.mrf.mxu0 }
 0x7fa   : > { %v5064_v9 = vadd.f32 %v3511_v10, %v3510_v7 }
 0x7fb   : > { %v3513_v5 = vpop.f32.mrf.mxu0 }
 0x7fd   : > { %v3514_v42 = vpop.f32.mrf.mxu0 }
 0x7fe   : > { %v5066_v29 = vadd.f32 %v3514_v42, %v3513_v5 }
 0x7ff   : > { %v3516_v47 = vpop.f32.mrf.mxu0 }
 0x801   : > { %v3517_v40 = vpop.f32.mrf.mxu0 }
 0x802   : > { %v5068_v53 = vadd.f32 %v3517_v40, %v3516_v47 }
 0x803   : > { %v3519_v15 = vpop.f32.mrf.mxu0 }
 0x805   : > { %v3520_v13 = vpop.f32.mrf.mxu0 }
 0x806   : > { %v5070_v2 = vadd.f32 %v3520_v13, %v3519_v15 }
 0x807   : > { %v3522_v61 = vpop.f32.mrf.mxu0 }
 0x809   : > { %v3523_v26 = vpop.f32.mrf.mxu0 }
 0x80a   : > { %v5072_v19 = vadd.f32 %v3523_v26, %v3522_v61 }
 0x80b   : > { %v3525_v27 = vpop.f32.mrf.mxu0 }
 0x80d   : > { %v3526_v22 = vpop.f32.mrf.mxu0 }
 0x80e   : > { %v5074_v16 = vadd.f32 %v3526_v22, %v3525_v27 }
 0x80f   : > { %v3528_v8 = vpop.f32.mrf.mxu0 }
 0x811   : > { %v3529_v41 = vpop.f32.mrf.mxu0 }
 0x812   : > { %v5076_v56 = vadd.f32 %v3529_v41, %v3528_v8 }
 0x813   : > { %v3531_v20 = vpop.f32.mrf.mxu0 }
 0x815   : > { %v3532_v33 = vpop.f32.mrf.mxu0 }
 0x816   : > { %v5078_v35 = vadd.f32 %v3532_v33, %v3531_v20 }
 0x817   : > { %v3550_v57 = vpop.f32.mrf.mxu0 }
 0x819   : > { %v3551_v55 = vpop.f32.mrf.mxu0 }
 0x81a   : > { %v3552_v39 = vadd.f32 %v3551_v55, %v3550_v57 }
 0x81b   : > { %v3553_v58 = vpop.f32.mrf.mxu0 }
 0x81c   : > { %v3109_v44 = vadd.f32 %v3552_v39, %v3488_v62 }
 0x81d   : > { %v3554_v43 = vpop.f32.mrf.mxu0 }
 0x81e   : > { %v3187_v25 = vadd.f32 %v3171_v23, %v3109_v44  ;;  %v3555_v50 = vadd.f32 %v3554_v43, %v3553_v58 }
 0x81f   : > { %v3556_v1 = vpop.f32.mrf.mxu0 }
 0x820   : > { %3204 = vst.msk [vmem:[%s5087_s22] sm:$0xff] %vm1603_vm1, %v3187_v25  ;;  %v3112_v4 = vadd.f32 %v3555_v50, %v3491_v36 }
 0x821   : > { %v3557_v59 = vpop.f32.mrf.mxu0 }
 0x822   : > { %v3188_v32 = vadd.f32 %v3172_v49, %v3112_v4  ;;  %v3558_v31 = vadd.f32 %v3557_v59, %v3556_v1 }
 0x823   : > { %v3559_v63 = vpop.f32.mrf.mxu0 }
 0x824   : > { %3205 = vst.msk [vmem:[%s5087_s22 + $0x8] sm:$0xff] %vm1603_vm1, %v3188_v32  ;;  %v3117_v52 = vadd.f32 %v3558_v31, %v3494_v24  ;;  %v3175_v24 = vld [vmem:[%s5196_s8 + $0x3a0] sm:$0xff] }
 0x825   : > { %v3560_v62 = vpop.f32.mrf.mxu0 }
 0x826   : > { %v3189_v12 = vadd.f32 %v3173_v60, %v3117_v52  ;;  %v3561_v37 = vadd.f32 %v3560_v62, %v3559_v63 }
 0x827   : > { %v3562_v36 = vpop.f32.mrf.mxu0 }
 0x828   : > { %3206 = vst.msk [vmem:[%s5087_s22 + $0x10] sm:$0xff] %vm1603_vm1, %v3189_v12  ;;  %v3120_v30 = vadd.f32 %v3561_v37, %v5054_v34  ;;  %v3176_v34 = vld [vmem:[%s5196_s8 + $0x3a8] sm:$0xff] }
 0x829   : > { %v3563_v6 = vpop.f32.mrf.mxu0 }
 0x82a   : > { %v3190_v48 = vadd.f32 %v3174_v14, %v3120_v30  ;;  %v3564_v28 = vadd.f32 %v3563_v6, %v3562_v36 }
 0x82b   : > { %v3565_v54 = vpop.f32.mrf.mxu0 }
 0x82c   : > { %3207 = vst.msk [vmem:[%s5087_s22 + $0x18] sm:$0xff] %vm1603_vm1, %v3190_v48  ;;  %v3125_v46 = vadd.f32 %v3564_v28, %v5056_v51  ;;  %v3177_v51 = vld [vmem:[%s5196_s8 + $0x3b0] sm:$0xff] }
 0x82d   : > { %v3566_v0 = vpop.f32.mrf.mxu0 }
 0x82e   : > { %v3191_v45 = vadd.f32 %v3175_v24, %v3125_v46  ;;  %v3567_v17 = vadd.f32 %v3566_v0, %v3565_v54 }
 0x82f   : > { %v3568_v38 = vpop.f32.mrf.mxu0 }
 0x830   : > { %3208 = vst.msk [vmem:[%s5087_s22 + $0x20] sm:$0xff] %vm1603_vm1, %v3191_v45  ;;  %v3128_v11 = vadd.f32 %v3567_v17, %v5058_v3  ;;  %v3178_v3 = vld [vmem:[%s5196_s8 + $0x3b8] sm:$0xff] }
 0x831   : > { %v3569_v7 = vpop.f32.mrf.mxu0  ;;  %v3186_v17 = vld [vmem:[%s5196_s8 + $0x3f8] sm:$0xff] }
 0x832   : > { %v3192_v10 = vadd.f32 %v3176_v34, %v3128_v11  ;;  %v3570_v5 = vadd.f32 %v3569_v7, %v3568_v38 }
 0x833   : > { %v3571_v42 = vpop.f32.mrf.mxu0 }
 0x834   : > { %3209 = vst.msk [vmem:[%s5087_s22 + $0x28] sm:$0xff] %vm1603_vm1, %v3192_v10  ;;  %v3133_v47 = vadd.f32 %v3570_v5, %v5060_v21  ;;  %v3179_v21 = vld [vmem:[%s5196_s8 + $0x3c0] sm:$0xff] }
 0x835   : > { %v3572_v40 = vpop.f32.mrf.mxu0 }
 0x836   : > { %v3193_v15 = vadd.f32 %v3177_v51, %v3133_v47  ;;  %v3573_v13 = vadd.f32 %v3572_v40, %v3571_v42 }
 0x837   : > { %v3574_v61 = vpop.f32.mrf.mxu0 }
 0x838   : > { %3210 = vst.msk [vmem:[%s5087_s22 + $0x30] sm:$0xff] %vm1603_vm1, %v3193_v15  ;;  %v3136_v26 = vadd.f32 %v3573_v13, %v5062_v18  ;;  %v3180_v18 = vld [vmem:[%s5196_s8 + $0x3c8] sm:$0xff] }
 0x839   : > { %v3575_v27 = vpop.f32.mrf.mxu0 }
 0x83a   : > { %v3194_v22 = vadd.f32 %v3178_v3, %v3136_v26  ;;  %v3576_v8 = vadd.f32 %v3575_v27, %v3574_v61 }
 0x83b   : > { %v3577_v41 = vpop.f32.mrf.mxu0 }
 0x83c   : > { %3211 = vst.msk [vmem:[%s5087_s22 + $0x38] sm:$0xff] %vm1603_vm1, %v3194_v22  ;;  %v3141_v20 = vadd.f32 %v3576_v8, %v5064_v9  ;;  %v3181_v9 = vld [vmem:[%s5196_s8 + $0x3d0] sm:$0xff] }
 0x83d   : > { %v3578_v33 = vpop.f32.mrf.mxu0 }
 0x83e   : > { %v3195_v57 = vadd.f32 %v3179_v21, %v3141_v20  ;;  %v3579_v55 = vadd.f32 %v3578_v33, %v3577_v41 }
 0x83f   : > { %v3580_v39 = vpop.f32.mrf.mxu0 }
 0x840   : > { %3212 = vst.msk [vmem:[%s5087_s22 + $0x40] sm:$0xff] %vm1603_vm1, %v3195_v57  ;;  %v3144_v23 = vadd.f32 %v3579_v55, %v5066_v29  ;;  %v3182_v29 = vld [vmem:[%s5196_s8 + $0x3d8] sm:$0xff] }
 0x841   : > { %v3581_v58 = vpop.f32.mrf.mxu0 }
 0x842   : > { %v3196_v44 = vadd.f32 %v3180_v18, %v3144_v23  ;;  %v3582_v43 = vadd.f32 %v3581_v58, %v3580_v39 }
 0x843   : > { %v3583_v25 = vpop.f32.mrf.mxu0 }
 0x844   : > { %3213 = vst.msk [vmem:[%s5087_s22 + $0x48] sm:$0xff] %vm1603_vm1, %v3196_v44  ;;  %v3149_v50 = vadd.f32 %v3582_v43, %v5068_v53  ;;  %v3183_v53 = vld [vmem:[%s5196_s8 + $0x3e0] sm:$0xff] }
 0x845   : > { %v3584_v49 = vpop.f32.mrf.mxu0 }
 0x846   : > { %v3197_v1 = vadd.f32 %v3181_v9, %v3149_v50  ;;  %v3585_v4 = vadd.f32 %v3584_v49, %v3583_v25 }
 0x847   : > { %v3586_v59 = vpop.f32.mrf.mxu0 }
 0x848   : > { %3214 = vst.msk [vmem:[%s5087_s22 + $0x50] sm:$0xff] %vm1603_vm1, %v3197_v1  ;;  %v3152_v32 = vadd.f32 %v3585_v4, %v5070_v2  ;;  %v3184_v2 = vld [vmem:[%s5196_s8 + $0x3e8] sm:$0xff] }
 0x849   : > { %v3587_v31 = vpop.f32.mrf.mxu0 }
 0x84a   : > { %v3198_v60 = vadd.f32 %v3182_v29, %v3152_v32  ;;  %v3588_v63 = vadd.f32 %v3587_v31, %v3586_v59 }
 0x84b   : > { %v3589_v52 = vpop.f32.mrf.mxu0 }
 0x84c   : > { %3215 = vst.msk [vmem:[%s5087_s22 + $0x58] sm:$0xff] %vm1603_vm1, %v3198_v60  ;;  %v3157_v62 = vadd.f32 %v3588_v63, %v5072_v19  ;;  %v3185_v19 = vld [vmem:[%s5196_s8 + $0x3f0] sm:$0xff] }
 0x84d   : > { %v3590_v12 = vpop.f32.mrf.mxu0 }
 0x84e   : > { %v3199_v37 = vadd.f32 %v3183_v53, %v3157_v62  ;;  %v3591_v14 = vadd.f32 %v3590_v12, %v3589_v52 }
 0x84f   : > { %v3592_v36 = vpop.f32.mrf.mxu0 }
 0x850   : > { %3216 = vst.msk [vmem:[%s5087_s22 + $0x60] sm:$0xff] %vm1603_vm1, %v3199_v37  ;;  %v3160_v30 = vadd.f32 %v3591_v14, %v5074_v16 }
 0x851   : > { %v3593_v6 = vpop.f32.mrf.mxu0 }
 0x852   : > { %v3200_v48 = vadd.f32 %v3184_v2, %v3160_v30  ;;  %v3594_v28 = vadd.f32 %v3593_v6, %v3592_v36 }
 0x853   : > { %v3595_v24 = vpop.f32.mrf.mxu0 }
 0x854   : > { %3217 = vst.msk [vmem:[%s5087_s22 + $0x68] sm:$0xff] %vm1603_vm1, %v3200_v48  ;;  %v3165_v54 = vadd.f32 %v3594_v28, %v5076_v56 }
 0x855   : > { %v3596_v46 = vpop.f32.mrf.mxu0 }
 0x856   : > { %v3201_v0 = vadd.f32 %v3185_v19, %v3165_v54  ;;  %v3597_v45 = vadd.f32 %v3596_v46, %v3595_v24 }
 0x858   : > { %3218 = vst.msk [vmem:[%s5087_s22 + $0x70] sm:$0xff] %vm1603_vm1, %v3201_v0  ;;  %v3168_v16 = vadd.f32 %v3597_v45, %v5078_v35 }
 0x85a   : > { %v3202_v34 = vadd.f32 %v3186_v17, %v3168_v16 }
 0x85c   : > { %3219 = vst.msk [vmem:[%s5087_s22 + $0x78] sm:$0xff] %vm1603_vm1, %v3202_v34 }
 0x85d PF: > { %s19_s11 = sadd.s32 1, %s3862_s11   ;;  %s5250_s30 = smov %s3858_s10 }
 0x85e   : > { %p16_p5 = scmp.ge.s32.totalorder %s19_s11, 4   ;;  %s5251_s10 = smov %s5253_s12 }
 0x860   :  { %18 = sbr.rel (!%p16_p5) target bundleno = 2 (0x2), region = 98 }

</bundles_post_ra>
